<compile_context>
chip_gen: v7x
topology: tpu7x:2x2x1
jax: 0.10.0
libtpu: 0.0.40
codegen_flags: <defaults>
</compile_context>

<pallas_src>
import functools
import math

import jax
import jax.numpy as jnp
import numpy as np
from jax.experimental import pallas as pl
from jax.experimental.pallas import tpu as pltpu

EPS = 1e-5  # nn.LayerNorm default


def _layer_norm(y, gamma, beta):
    mu = jnp.mean(y, axis=-1, keepdims=True)
    var = jnp.mean((y - mu) ** 2, axis=-1, keepdims=True)
    return (y - mu) * jax.lax.rsqrt(var + EPS) * gamma + beta


def encoder_block_kernel(
    x_ref,
    wq_ref, bq_ref, wk_ref, bk_ref, wv_ref, bv_ref, wo_ref, bo_ref,
    g1_ref, be1_ref,
    w1_ref, b1_ref, w2_ref, b2_ref,
    g2_ref, be2_ref,
    o_ref,
    ctx_ref,
    *, heads: int,
):
    Bblk, S, E = x_ref.shape
    dh = E // heads
    scale = 1.0 / math.sqrt(dh)

    x = x_ref[...]                               # (Bblk, S, E) f32
    x2 = x.reshape(Bblk * S, E)                  # merge leading dims (no relayout)
    x2_bf = x2.astype(jnp.bfloat16)

    # ---- fused Q/K/V projections over M = Bblk*S rows (bf16 in, f32 acc) ----
    q = jnp.dot(x2_bf, wq_ref[...], preferred_element_type=jnp.float32) + bq_ref[...]
    k = jnp.dot(x2_bf, wk_ref[...], preferred_element_type=jnp.float32) + bk_ref[...]
    v = jnp.dot(x2_bf, wv_ref[...], preferred_element_type=jnp.float32) + bv_ref[...]

    q = q * scale  # fold 1/sqrt(dh) once into q (cheaper than scaling SxS scores)

    q3 = q.reshape(Bblk, S, E).astype(jnp.bfloat16)
    k3 = k.reshape(Bblk, S, E).astype(jnp.bfloat16)
    v3 = v.reshape(Bblk, S, E).astype(jnp.bfloat16)

    # ---- multi-head self-attention, batched over the Bblk sequences ----
    # TODO(synk): for S >~ 1024 switch to a flash-style query-tiled online
    # softmax instead of materializing the (S, S) score matrix per head.
    for h in range(heads):                       # heads is small & static
        lo, hi = h * dh, (h + 1) * dh
        qh = q3[:, :, lo:hi]                     # (Bblk, S, dh)
        kh = k3[:, :, lo:hi]
        vh = v3[:, :, lo:hi]
        # Q @ K^T without an explicit transpose: contract on dh of both sides.
        s = jax.lax.dot_general(
            qh, kh,
            dimension_numbers=(((2,), (2,)), ((0,), (0,))),
            preferred_element_type=jnp.float32)              # (Bblk, S, S) f32
        m = jnp.max(s, axis=-1, keepdims=True)
        p = jnp.exp(s - m)
        denom = jnp.sum(p, axis=-1, keepdims=True)
        p = p * pl.reciprocal(denom, approx=True)            # EUP, frees VPU divide
        ctx_h = jax.lax.dot_general(
            p.astype(jnp.bfloat16), vh,
            dimension_numbers=(((2,), (1,)), ((0,), (0,))),
            preferred_element_type=jnp.float32)              # (Bblk, S, dh) f32
        ctx_ref[:, :, lo:hi] = ctx_h                         # head columns -> scratch

    ctx = ctx_ref[...].reshape(Bblk * S, E).astype(jnp.bfloat16)
    attn = jnp.dot(ctx, wo_ref[...], preferred_element_type=jnp.float32) + bo_ref[...]

    # ---- residual + layer norm 1 (f32) ----
    n1 = _layer_norm(attn + x2, g1_ref[...], be1_ref[...])

    # ---- feed-forward: Linear -> ReLU -> Linear (bf16 in, f32 acc) ----
    hdn = jnp.dot(n1.astype(jnp.bfloat16), w1_ref[...],
                  preferred_element_type=jnp.float32) + b1_ref[...]
    hdn = jnp.maximum(hdn, 0.0)
    ff = jnp.dot(hdn.astype(jnp.bfloat16), w2_ref[...],
                 preferred_element_type=jnp.float32) + b2_ref[...]

    # ---- residual + layer norm 2 (f32) ----
    o_ref[...] = _layer_norm(ff + n1, g2_ref[...], be2_ref[...]).reshape(Bblk, S, E)


_WEIGHT_KEYS = ("wq", "wk", "wv", "wo", "w1", "w2")


def _pick_block_batch(N, S, target_rows=256):
    """Fold batch elements into the matmul M dim (bounded working set), but
    keep >= 2 grid steps when possible so both v7x TensorCores get work."""
    best = 1
    for d in range(1, N + 1):
        if N % d != 0:
            continue
        if d * S > target_rows:
            continue
        if N // d < 2 and N >= 2:
            continue
        best = d
    return best


def _vmem_limit_bytes(Bblk, S, E, F):
    w_bytes = 2 * (4 * E * E + 2 * E * F)             # bf16 weight matrices
    vec_bytes = 4 * (8 * E + F)                       # f32 biases + LN params
    io_bytes = 4 * Bblk * S * E                       # one (Bblk, S, E) f32 block
    work_bytes = 4 * Bblk * S * (6 * E + F + S)       # rough live activations
    need = 2 * (w_bytes + vec_bytes) + 5 * io_bytes + work_bytes
    try:
        cap = int(0.75 * pltpu.get_tpu_info().vmem_capacity_bytes)
    except Exception:
        cap = 64 * 1024 * 1024                        # safe on v5e/v6e/v7x
    return int(min(max(need + (8 << 20), 32 << 20), cap))


def encoder_block(x, params, heads):
    N, S, E = x.shape
    F = params["w1"].shape[1]
    Bblk = _pick_block_batch(N, S)
    grid = (N // Bblk,)

    # bf16 weight matrices for the MXU; biases / LayerNorm params stay f32.
    p = {k: (v.astype(jnp.bfloat16) if k in _WEIGHT_KEYS else v)
         for k, v in params.items()}

    def full_spec(shape):
        # whole (grid-invariant) parameter, same block every grid step -> no re-DMA
        return pl.BlockSpec(shape, lambda b: tuple(0 for _ in shape))

    in_specs = [
        pl.BlockSpec((Bblk, S, E), lambda b: (b, 0, 0)),    # x
        full_spec((E, E)), full_spec((1, E)),               # wq, bq
        full_spec((E, E)), full_spec((1, E)),               # wk, bk
        full_spec((E, E)), full_spec((1, E)),               # wv, bv
        full_spec((E, E)), full_spec((1, E)),               # wo, bo
        full_spec((1, E)), full_spec((1, E)),               # gamma1, beta1
        full_spec((E, F)), full_spec((1, F)),               # w1, b1
        full_spec((F, E)), full_spec((1, E)),               # w2, b2
        full_spec((1, E)), full_spec((1, E)),               # gamma2, beta2
    ]

    kernel = functools.partial(encoder_block_kernel, heads=heads)

    flops = int(N * S * (2 * (4 * E * E + 2 * E * F) + 4 * S * E))
    transcendentals = int(N * heads * S * S + 2 * N * S)
    bytes_accessed = int(8 * N * S * E + 2 * (4 * E * E + 2 * E * F) + 4 * (8 * E + F))

    return pl.pallas_call(
        kernel,
        out_shape=jax.ShapeDtypeStruct((N, S, E), jnp.float32),
        grid_spec=pltpu.PrefetchScalarGridSpec(
            num_scalar_prefetch=0,
            grid=grid,
            in_specs=in_specs,
            out_specs=pl.BlockSpec((Bblk, S, E), lambda b: (b, 0, 0)),
            scratch_shapes=[pltpu.VMEM((Bblk, S, E), jnp.float32)],
        ),
        compiler_params=pltpu.CompilerParams(
            dimension_semantics=("parallel",),
            vmem_limit_bytes=_vmem_limit_bytes(Bblk, S, E, F),
        ),
        cost_estimate=pl.CostEstimate(
            flops=flops,
            transcendentals=transcendentals,
            bytes_accessed=bytes_accessed),
    )(
        x,
        p["wq"], p["bq"], p["wk"], p["bk"],
        p["wv"], p["bv"], p["wo"], p["bo"],
        p["g1"], p["be1"],
        p["w1"], p["b1"], p["w2"], p["b2"],
        p["g2"], p["be2"],
    )


def encoder_block_ref(x, params, heads):
    """Pure-JAX f32 reference mirroring the PyTorch forward (eval mode)."""
    N, S, E = x.shape
    dh = E // heads

    def lin(z, w, b):
        return z @ w + b[0]

    q = lin(x, params["wq"], params["bq"]).reshape(N, S, heads, dh).transpose(0, 2, 1, 3)
    k = lin(x, params["wk"], params["bk"]).reshape(N, S, heads, dh).transpose(0, 2, 1, 3)
    v = lin(x, params["wv"], params["bv"]).reshape(N, S, heads, dh).transpose(0, 2, 1, 3)
    scores = jnp.einsum("nhsd,nhtd->nhst", q, k) / math.sqrt(dh)
    p = jax.nn.softmax(scores, axis=-1)
    ctx = jnp.einsum("nhst,nhtd->nhsd", p, v).transpose(0, 2, 1, 3).reshape(N, S, E)
    attn = lin(ctx, params["wo"], params["bo"])

    def ln(y, g, b):
        mu = y.mean(-1, keepdims=True)
        var = ((y - mu) ** 2).mean(-1, keepdims=True)
        return (y - mu) / jnp.sqrt(var + EPS) * g[0] + b[0]

    n1 = ln(attn + x, params["g1"], params["be1"])
    ff = lin(jnp.maximum(lin(n1, params["w1"], params["b1"]), 0.0),
             params["w2"], params["b2"])
    return ln(ff + n1, params["g2"], params["be2"])


def init_params(key, E, F):
    ks = jax.random.split(key, 12)
    s = 0.05
    return {
        "wq": s * jax.random.normal(ks[0], (E, E), jnp.float32),
        "bq": s * jax.random.normal(ks[1], (1, E), jnp.float32),
        "wk": s * jax.random.normal(ks[2], (E, E), jnp.float32),
        "bk": s * jax.random.normal(ks[3], (1, E), jnp.float32),
        "wv": s * jax.random.normal(ks[4], (E, E), jnp.float32),
        "bv": s * jax.random.normal(ks[5], (1, E), jnp.float32),
        "wo": s * jax.random.normal(ks[6], (E, E), jnp.float32),
        "bo": s * jax.random.normal(ks[7], (1, E), jnp.float32),
        "w1": s * jax.random.normal(ks[8], (E, F), jnp.float32),
        "b1": s * jax.random.normal(ks[9], (1, F), jnp.float32),
        "w2": s * jax.random.normal(ks[10], (F, E), jnp.float32),
        "b2": s * jax.random.normal(ks[11], (1, E), jnp.float32),
        "g1": jnp.ones((1, E), jnp.float32),
        "be1": jnp.zeros((1, E), jnp.float32),
        "g2": jnp.ones((1, E), jnp.float32),
        "be2": jnp.zeros((1, E), jnp.float32),
    }


if __name__ == "__main__":
    N, S, E, H, Fdim = 2, 8, 32, 4, 64
    key = jax.random.PRNGKey(0)
    kx, kp = jax.random.split(key)
    x = jax.random.normal(kx, (N, S, E), jnp.float32)
    params = init_params(kp, E, Fdim)

    out = encoder_block(x, params, heads=H)
    out = jax.block_until_ready(out)

    ref = encoder_block_ref(x, params, heads=H)
    # Tolerance loosened vs. pure-f32: kernel feeds bf16 operands to the MXU
    # (f32 accumulation; LayerNorm/softmax in f32).
    np.testing.assert_allclose(np.asarray(out), np.asarray(ref), rtol=2e-2, atol=2e-2)

    print("KERNEL_OK")
</pallas_src>

<mosaic_0001>
module attributes {stable_mosaic.version = 11 : i64} {
  func.func @encoder_block_kernel(%arg0: i32, %arg1: memref<1x8x32xf32, #tpu.memory_space<vmem>>, %arg2: memref<32x32xbf16, #tpu.memory_space<vmem>>, %arg3: memref<1x32xf32, #tpu.memory_space<vmem>>, %arg4: memref<32x32xbf16, #tpu.memory_space<vmem>>, %arg5: memref<1x32xf32, #tpu.memory_space<vmem>>, %arg6: memref<32x32xbf16, #tpu.memory_space<vmem>>, %arg7: memref<1x32xf32, #tpu.memory_space<vmem>>, %arg8: memref<32x32xbf16, #tpu.memory_space<vmem>>, %arg9: memref<1x32xf32, #tpu.memory_space<vmem>>, %arg10: memref<1x32xf32, #tpu.memory_space<vmem>>, %arg11: memref<1x32xf32, #tpu.memory_space<vmem>>, %arg12: memref<32x64xbf16, #tpu.memory_space<vmem>>, %arg13: memref<1x64xf32, #tpu.memory_space<vmem>>, %arg14: memref<64x32xbf16, #tpu.memory_space<vmem>>, %arg15: memref<1x32xf32, #tpu.memory_space<vmem>>, %arg16: memref<1x32xf32, #tpu.memory_space<vmem>>, %arg17: memref<1x32xf32, #tpu.memory_space<vmem>>, %arg18: memref<1x8x32xf32, #tpu.memory_space<vmem>>, %arg19: memref<1x8x32xf32, #tpu.memory_space<vmem>>) attributes {dimension_semantics = [#tpu.dimension_semantics<parallel>], iteration_bounds = array<i64: 2>, scalar_prefetch = 0 : i64, scratch_operands = 1 : i64, tpu.core_type = #tpu.core_type<tc>, window_params = [{transform_indices = @transform_0, window_bounds = array<i64: 1, 8, 32>}, {pipeline_mode = #tpu.pipeline_mode<synchronous>, transform_indices = @transform_1, window_bounds = array<i64: 32, 32>}, {pipeline_mode = #tpu.pipeline_mode<synchronous>, transform_indices = @transform_2, window_bounds = array<i64: 1, 32>}, {pipeline_mode = #tpu.pipeline_mode<synchronous>, transform_indices = @transform_3, window_bounds = array<i64: 32, 32>}, {pipeline_mode = #tpu.pipeline_mode<synchronous>, transform_indices = @transform_4, window_bounds = array<i64: 1, 32>}, {pipeline_mode = #tpu.pipeline_mode<synchronous>, transform_indices = @transform_5, window_bounds = array<i64: 32, 32>}, {pipeline_mode = #tpu.pipeline_mode<synchronous>, transform_indices = @transform_6, window_bounds = array<i64: 1, 32>}, {pipeline_mode = #tpu.pipeline_mode<synchronous>, transform_indices = @transform_7, window_bounds = array<i64: 32, 32>}, {pipeline_mode = #tpu.pipeline_mode<synchronous>, transform_indices = @transform_8, window_bounds = array<i64: 1, 32>}, {pipeline_mode = #tpu.pipeline_mode<synchronous>, transform_indices = @transform_9, window_bounds = array<i64: 1, 32>}, {pipeline_mode = #tpu.pipeline_mode<synchronous>, transform_indices = @transform_10, window_bounds = array<i64: 1, 32>}, {pipeline_mode = #tpu.pipeline_mode<synchronous>, transform_indices = @transform_11, window_bounds = array<i64: 32, 64>}, {pipeline_mode = #tpu.pipeline_mode<synchronous>, transform_indices = @transform_12, window_bounds = array<i64: 1, 64>}, {pipeline_mode = #tpu.pipeline_mode<synchronous>, transform_indices = @transform_13, window_bounds = array<i64: 64, 32>}, {pipeline_mode = #tpu.pipeline_mode<synchronous>, transform_indices = @transform_14, window_bounds = array<i64: 1, 32>}, {pipeline_mode = #tpu.pipeline_mode<synchronous>, transform_indices = @transform_15, window_bounds = array<i64: 1, 32>}, {pipeline_mode = #tpu.pipeline_mode<synchronous>, transform_indices = @transform_16, window_bounds = array<i64: 1, 32>}, {transform_indices = @transform_17, window_bounds = array<i64: 1, 8, 32>}]} {
    %c0 = arith.constant 0 : index
    %c0_0 = arith.constant 0 : index
    %c0_1 = arith.constant 0 : index
    %0 = vector.load %arg1[%c0, %c0_0, %c0_1] : memref<1x8x32xf32, #tpu.memory_space<vmem>>, vector<1x8x32xf32>
    %1 = vector.shape_cast %0 : vector<1x8x32xf32> to vector<8x32xf32>
    %2 = arith.truncf %1 : vector<8x32xf32> to vector<8x32xbf16>
    %c0_2 = arith.constant 0 : index
    %c0_3 = arith.constant 0 : index
    %3 = vector.load %arg2[%c0_2, %c0_3] : memref<32x32xbf16, #tpu.memory_space<vmem>>, vector<32x32xbf16>
    %cst = arith.constant dense<0.000000e+00> : vector<8x32xf32>
    %4 = tpu.matmul %2, %3, %cst {dimension_numbers = #tpu.dot_dimension_numbers<[1], [0], [0], [1], [0, 0, 1, 1], [], []>} : vector<8x32xbf16>, vector<32x32xbf16>, vector<8x32xf32> -> vector<8x32xf32>
    %c0_4 = arith.constant 0 : index
    %c0_5 = arith.constant 0 : index
    %5 = vector.load %arg3[%c0_4, %c0_5] : memref<1x32xf32, #tpu.memory_space<vmem>>, vector<1x32xf32>
    %6 = vector.broadcast %5 : vector<1x32xf32> to vector<8x32xf32>
    %7 = arith.addf %4, %6 : vector<8x32xf32>
    %c0_6 = arith.constant 0 : index
    %c0_7 = arith.constant 0 : index
    %8 = vector.load %arg4[%c0_6, %c0_7] : memref<32x32xbf16, #tpu.memory_space<vmem>>, vector<32x32xbf16>
    %cst_8 = arith.constant dense<0.000000e+00> : vector<8x32xf32>
    %9 = tpu.matmul %2, %8, %cst_8 {dimension_numbers = #tpu.dot_dimension_numbers<[1], [0], [0], [1], [0, 0, 1, 1], [], []>} : vector<8x32xbf16>, vector<32x32xbf16>, vector<8x32xf32> -> vector<8x32xf32>
    %c0_9 = arith.constant 0 : index
    %c0_10 = arith.constant 0 : index
    %10 = vector.load %arg5[%c0_9, %c0_10] : memref<1x32xf32, #tpu.memory_space<vmem>>, vector<1x32xf32>
    %11 = vector.broadcast %10 : vector<1x32xf32> to vector<8x32xf32>
    %12 = arith.addf %9, %11 : vector<8x32xf32>
    %c0_11 = arith.constant 0 : index
    %c0_12 = arith.constant 0 : index
    %13 = vector.load %arg6[%c0_11, %c0_12] : memref<32x32xbf16, #tpu.memory_space<vmem>>, vector<32x32xbf16>
    %cst_13 = arith.constant dense<0.000000e+00> : vector<8x32xf32>
    %14 = tpu.matmul %2, %13, %cst_13 {dimension_numbers = #tpu.dot_dimension_numbers<[1], [0], [0], [1], [0, 0, 1, 1], [], []>} : vector<8x32xbf16>, vector<32x32xbf16>, vector<8x32xf32> -> vector<8x32xf32>
    %c0_14 = arith.constant 0 : index
    %c0_15 = arith.constant 0 : index
    %15 = vector.load %arg7[%c0_14, %c0_15] : memref<1x32xf32, #tpu.memory_space<vmem>>, vector<1x32xf32>
    %16 = vector.broadcast %15 : vector<1x32xf32> to vector<8x32xf32>
    %17 = arith.addf %14, %16 : vector<8x32xf32>
    %cst_16 = arith.constant 0.353553385 : f32
    %18 = vector.broadcast %cst_16 : f32 to vector<8x32xf32>
    %19 = arith.mulf %7, %18 : vector<8x32xf32>
    %20 = vector.shape_cast %19 : vector<8x32xf32> to vector<1x8x32xf32>
    %21 = arith.truncf %20 : vector<1x8x32xf32> to vector<1x8x32xbf16>
    %22 = vector.shape_cast %12 : vector<8x32xf32> to vector<1x8x32xf32>
    %23 = arith.truncf %22 : vector<1x8x32xf32> to vector<1x8x32xbf16>
    %24 = vector.shape_cast %17 : vector<8x32xf32> to vector<1x8x32xf32>
    %25 = arith.truncf %24 : vector<1x8x32xf32> to vector<1x8x32xbf16>
    %26 = vector.extract_strided_slice %21 {offsets = [0, 0, 0], sizes = [1, 8, 8], strides = [1, 1, 1]} : vector<1x8x32xbf16> to vector<1x8x8xbf16>
    %27 = vector.extract_strided_slice %23 {offsets = [0, 0, 0], sizes = [1, 8, 8], strides = [1, 1, 1]} : vector<1x8x32xbf16> to vector<1x8x8xbf16>
    %28 = vector.extract_strided_slice %25 {offsets = [0, 0, 0], sizes = [1, 8, 8], strides = [1, 1, 1]} : vector<1x8x32xbf16> to vector<1x8x8xbf16>
    %cst_17 = arith.constant dense<0.000000e+00> : vector<1x8x8xf32>
    %29 = tpu.matmul %26, %27, %cst_17 {dimension_numbers = #tpu.dot_dimension_numbers<[2], [2], [1], [1], [0, 0, 0, 1, 1, 1], [0], [0]>} : vector<1x8x8xbf16>, vector<1x8x8xbf16>, vector<1x8x8xf32> -> vector<1x8x8xf32>
    %cst_18 = arith.constant dense<0xFF800000> : vector<1x8xf32>
    %30 = vector.multi_reduction <maximumf>, %29, %cst_18 [2] : vector<1x8x8xf32> to vector<1x8xf32>
    %31 = vector.shape_cast %30 : vector<1x8xf32> to vector<1x8x1xf32>
    %32 = vector.broadcast %31 : vector<1x8x1xf32> to vector<1x8x8xf32>
    %33 = arith.subf %29, %32 : vector<1x8x8xf32>
    %34 = math.exp %33 : vector<1x8x8xf32>
    %cst_19 = arith.constant dense<0.000000e+00> : vector<1x8xf32>
    %35 = vector.multi_reduction <add>, %34, %cst_19 [2] : vector<1x8x8xf32> to vector<1x8xf32>
    %36 = vector.shape_cast %35 : vector<1x8xf32> to vector<1x8x1xf32>
    %37 = tpu.reciprocal %36 {approx = true} : vector<1x8x1xf32> -> vector<1x8x1xf32>
    %38 = vector.broadcast %37 : vector<1x8x1xf32> to vector<1x8x8xf32>
    %39 = arith.mulf %34, %38 : vector<1x8x8xf32>
    %40 = arith.truncf %39 : vector<1x8x8xf32> to vector<1x8x8xbf16>
    %cst_20 = arith.constant dense<0.000000e+00> : vector<1x8x8xf32>
    %41 = tpu.matmul %40, %28, %cst_20 {dimension_numbers = #tpu.dot_dimension_numbers<[2], [1], [1], [2], [0, 0, 0, 1, 1, 2], [0], [0]>} : vector<1x8x8xbf16>, vector<1x8x8xbf16>, vector<1x8x8xf32> -> vector<1x8x8xf32>
    %c0_21 = arith.constant 0 : index
    %c0_22 = arith.constant 0 : index
    %c0_23 = arith.constant 0 : index
    %42 = vector.load %arg19[%c0_21, %c0_22, %c0_23] : memref<1x8x32xf32, #tpu.memory_space<vmem>>, vector<1x8x8xf32>
    tpu.vector_store %arg19[%c0_21, %c0_22, %c0_23], %41 {strides = array<i32>} : memref<1x8x32xf32, #tpu.memory_space<vmem>>, vector<1x8x8xf32>,
    %43 = vector.extract_strided_slice %21 {offsets = [0, 0, 8], sizes = [1, 8, 8], strides = [1, 1, 1]} : vector<1x8x32xbf16> to vector<1x8x8xbf16>
    %44 = vector.extract_strided_slice %23 {offsets = [0, 0, 8], sizes = [1, 8, 8], strides = [1, 1, 1]} : vector<1x8x32xbf16> to vector<1x8x8xbf16>
    %45 = vector.extract_strided_slice %25 {offsets = [0, 0, 8], sizes = [1, 8, 8], strides = [1, 1, 1]} : vector<1x8x32xbf16> to vector<1x8x8xbf16>
    %cst_24 = arith.constant dense<0.000000e+00> : vector<1x8x8xf32>
    %46 = tpu.matmul %43, %44, %cst_24 {dimension_numbers = #tpu.dot_dimension_numbers<[2], [2], [1], [1], [0, 0, 0, 1, 1, 1], [0], [0]>} : vector<1x8x8xbf16>, vector<1x8x8xbf16>, vector<1x8x8xf32> -> vector<1x8x8xf32>
    %cst_25 = arith.constant dense<0xFF800000> : vector<1x8xf32>
    %47 = vector.multi_reduction <maximumf>, %46, %cst_25 [2] : vector<1x8x8xf32> to vector<1x8xf32>
    %48 = vector.shape_cast %47 : vector<1x8xf32> to vector<1x8x1xf32>
    %49 = vector.broadcast %48 : vector<1x8x1xf32> to vector<1x8x8xf32>
    %50 = arith.subf %46, %49 : vector<1x8x8xf32>
    %51 = math.exp %50 : vector<1x8x8xf32>
    %cst_26 = arith.constant dense<0.000000e+00> : vector<1x8xf32>
    %52 = vector.multi_reduction <add>, %51, %cst_26 [2] : vector<1x8x8xf32> to vector<1x8xf32>
    %53 = vector.shape_cast %52 : vector<1x8xf32> to vector<1x8x1xf32>
    %54 = tpu.reciprocal %53 {approx = true} : vector<1x8x1xf32> -> vector<1x8x1xf32>
    %55 = vector.broadcast %54 : vector<1x8x1xf32> to vector<1x8x8xf32>
    %56 = arith.mulf %51, %55 : vector<1x8x8xf32>
    %57 = arith.truncf %56 : vector<1x8x8xf32> to vector<1x8x8xbf16>
    %cst_27 = arith.constant dense<0.000000e+00> : vector<1x8x8xf32>
    %58 = tpu.matmul %57, %45, %cst_27 {dimension_numbers = #tpu.dot_dimension_numbers<[2], [1], [1], [2], [0, 0, 0, 1, 1, 2], [0], [0]>} : vector<1x8x8xbf16>, vector<1x8x8xbf16>, vector<1x8x8xf32> -> vector<1x8x8xf32>
    %c0_28 = arith.constant 0 : index
    %c0_29 = arith.constant 0 : index
    %c8 = arith.constant 8 : index
    %59 = vector.load %arg19[%c0_28, %c0_29, %c8] : memref<1x8x32xf32, #tpu.memory_space<vmem>>, vector<1x8x8xf32>
    tpu.vector_store %arg19[%c0_28, %c0_29, %c8], %58 {strides = array<i32>} : memref<1x8x32xf32, #tpu.memory_space<vmem>>, vector<1x8x8xf32>,
    %60 = vector.extract_strided_slice %21 {offsets = [0, 0, 16], sizes = [1, 8, 8], strides = [1, 1, 1]} : vector<1x8x32xbf16> to vector<1x8x8xbf16>
    %61 = vector.extract_strided_slice %23 {offsets = [0, 0, 16], sizes = [1, 8, 8], strides = [1, 1, 1]} : vector<1x8x32xbf16> to vector<1x8x8xbf16>
    %62 = vector.extract_strided_slice %25 {offsets = [0, 0, 16], sizes = [1, 8, 8], strides = [1, 1, 1]} : vector<1x8x32xbf16> to vector<1x8x8xbf16>
    %cst_30 = arith.constant dense<0.000000e+00> : vector<1x8x8xf32>
    %63 = tpu.matmul %60, %61, %cst_30 {dimension_numbers = #tpu.dot_dimension_numbers<[2], [2], [1], [1], [0, 0, 0, 1, 1, 1], [0], [0]>} : vector<1x8x8xbf16>, vector<1x8x8xbf16>, vector<1x8x8xf32> -> vector<1x8x8xf32>
    %cst_31 = arith.constant dense<0xFF800000> : vector<1x8xf32>
    %64 = vector.multi_reduction <maximumf>, %63, %cst_31 [2] : vector<1x8x8xf32> to vector<1x8xf32>
    %65 = vector.shape_cast %64 : vector<1x8xf32> to vector<1x8x1xf32>
    %66 = vector.broadcast %65 : vector<1x8x1xf32> to vector<1x8x8xf32>
    %67 = arith.subf %63, %66 : vector<1x8x8xf32>
    %68 = math.exp %67 : vector<1x8x8xf32>
    %cst_32 = arith.constant dense<0.000000e+00> : vector<1x8xf32>
    %69 = vector.multi_reduction <add>, %68, %cst_32 [2] : vector<1x8x8xf32> to vector<1x8xf32>
    %70 = vector.shape_cast %69 : vector<1x8xf32> to vector<1x8x1xf32>
    %71 = tpu.reciprocal %70 {approx = true} : vector<1x8x1xf32> -> vector<1x8x1xf32>
    %72 = vector.broadcast %71 : vector<1x8x1xf32> to vector<1x8x8xf32>
    %73 = arith.mulf %68, %72 : vector<1x8x8xf32>
    %74 = arith.truncf %73 : vector<1x8x8xf32> to vector<1x8x8xbf16>
    %cst_33 = arith.constant dense<0.000000e+00> : vector<1x8x8xf32>
    %75 = tpu.matmul %74, %62, %cst_33 {dimension_numbers = #tpu.dot_dimension_numbers<[2], [1], [1], [2], [0, 0, 0, 1, 1, 2], [0], [0]>} : vector<1x8x8xbf16>, vector<1x8x8xbf16>, vector<1x8x8xf32> -> vector<1x8x8xf32>
    %c0_34 = arith.constant 0 : index
    %c0_35 = arith.constant 0 : index
    %c16 = arith.constant 16 : index
    %76 = vector.load %arg19[%c0_34, %c0_35, %c16] : memref<1x8x32xf32, #tpu.memory_space<vmem>>, vector<1x8x8xf32>
    tpu.vector_store %arg19[%c0_34, %c0_35, %c16], %75 {strides = array<i32>} : memref<1x8x32xf32, #tpu.memory_space<vmem>>, vector<1x8x8xf32>,
    %77 = vector.extract_strided_slice %21 {offsets = [0, 0, 24], sizes = [1, 8, 8], strides = [1, 1, 1]} : vector<1x8x32xbf16> to vector<1x8x8xbf16>
    %78 = vector.extract_strided_slice %23 {offsets = [0, 0, 24], sizes = [1, 8, 8], strides = [1, 1, 1]} : vector<1x8x32xbf16> to vector<1x8x8xbf16>
    %79 = vector.extract_strided_slice %25 {offsets = [0, 0, 24], sizes = [1, 8, 8], strides = [1, 1, 1]} : vector<1x8x32xbf16> to vector<1x8x8xbf16>
    %cst_36 = arith.constant dense<0.000000e+00> : vector<1x8x8xf32>
    %80 = tpu.matmul %77, %78, %cst_36 {dimension_numbers = #tpu.dot_dimension_numbers<[2], [2], [1], [1], [0, 0, 0, 1, 1, 1], [0], [0]>} : vector<1x8x8xbf16>, vector<1x8x8xbf16>, vector<1x8x8xf32> -> vector<1x8x8xf32>
    %cst_37 = arith.constant dense<0xFF800000> : vector<1x8xf32>
    %81 = vector.multi_reduction <maximumf>, %80, %cst_37 [2] : vector<1x8x8xf32> to vector<1x8xf32>
    %82 = vector.shape_cast %81 : vector<1x8xf32> to vector<1x8x1xf32>
    %83 = vector.broadcast %82 : vector<1x8x1xf32> to vector<1x8x8xf32>
    %84 = arith.subf %80, %83 : vector<1x8x8xf32>
    %85 = math.exp %84 : vector<1x8x8xf32>
    %cst_38 = arith.constant dense<0.000000e+00> : vector<1x8xf32>
    %86 = vector.multi_reduction <add>, %85, %cst_38 [2] : vector<1x8x8xf32> to vector<1x8xf32>
    %87 = vector.shape_cast %86 : vector<1x8xf32> to vector<1x8x1xf32>
    %88 = tpu.reciprocal %87 {approx = true} : vector<1x8x1xf32> -> vector<1x8x1xf32>
    %89 = vector.broadcast %88 : vector<1x8x1xf32> to vector<1x8x8xf32>
    %90 = arith.mulf %85, %89 : vector<1x8x8xf32>
    %91 = arith.truncf %90 : vector<1x8x8xf32> to vector<1x8x8xbf16>
    %cst_39 = arith.constant dense<0.000000e+00> : vector<1x8x8xf32>
    %92 = tpu.matmul %91, %79, %cst_39 {dimension_numbers = #tpu.dot_dimension_numbers<[2], [1], [1], [2], [0, 0, 0, 1, 1, 2], [0], [0]>} : vector<1x8x8xbf16>, vector<1x8x8xbf16>, vector<1x8x8xf32> -> vector<1x8x8xf32>
    %c0_40 = arith.constant 0 : index
    %c0_41 = arith.constant 0 : index
    %c24 = arith.constant 24 : index
    %93 = vector.load %arg19[%c0_40, %c0_41, %c24] : memref<1x8x32xf32, #tpu.memory_space<vmem>>, vector<1x8x8xf32>
    tpu.vector_store %arg19[%c0_40, %c0_41, %c24], %92 {strides = array<i32>} : memref<1x8x32xf32, #tpu.memory_space<vmem>>, vector<1x8x8xf32>,
    %c0_42 = arith.constant 0 : index
    %c0_43 = arith.constant 0 : index
    %c0_44 = arith.constant 0 : index
    %94 = vector.load %arg19[%c0_42, %c0_43, %c0_44] : memref<1x8x32xf32, #tpu.memory_space<vmem>>, vector<1x8x32xf32>
    %95 = vector.shape_cast %94 : vector<1x8x32xf32> to vector<8x32xf32>
    %96 = arith.truncf %95 : vector<8x32xf32> to vector<8x32xbf16>
    %c0_45 = arith.constant 0 : index
    %c0_46 = arith.constant 0 : index
    %97 = vector.load %arg8[%c0_45, %c0_46] : memref<32x32xbf16, #tpu.memory_space<vmem>>, vector<32x32xbf16>
    %cst_47 = arith.constant dense<0.000000e+00> : vector<8x32xf32>
    %98 = tpu.matmul %96, %97, %cst_47 {dimension_numbers = #tpu.dot_dimension_numbers<[1], [0], [0], [1], [0, 0, 1, 1], [], []>} : vector<8x32xbf16>, vector<32x32xbf16>, vector<8x32xf32> -> vector<8x32xf32>
    %c0_48 = arith.constant 0 : index
    %c0_49 = arith.constant 0 : index
    %99 = vector.load %arg9[%c0_48, %c0_49] : memref<1x32xf32, #tpu.memory_space<vmem>>, vector<1x32xf32>
    %100 = vector.broadcast %99 : vector<1x32xf32> to vector<8x32xf32>
    %101 = arith.addf %98, %100 : vector<8x32xf32>
    %102 = arith.addf %101, %1 : vector<8x32xf32>
    %c0_50 = arith.constant 0 : index
    %c0_51 = arith.constant 0 : index
    %103 = vector.load %arg10[%c0_50, %c0_51] : memref<1x32xf32, #tpu.memory_space<vmem>>, vector<1x32xf32>
    %c0_52 = arith.constant 0 : index
    %c0_53 = arith.constant 0 : index
    %104 = vector.load %arg11[%c0_52, %c0_53] : memref<1x32xf32, #tpu.memory_space<vmem>>, vector<1x32xf32>
    %cst_54 = arith.constant dense<0.000000e+00> : vector<8xf32>
    %105 = vector.multi_reduction <add>, %102, %cst_54 [1] : vector<8x32xf32> to vector<8xf32>
    %106 = vector.shape_cast %105 : vector<8xf32> to vector<8x1xf32>
    %cst_55 = arith.constant 3.200000e+01 : f32
    %107 = vector.broadcast %cst_55 : f32 to vector<8x1xf32>
    %108 = arith.divf %106, %107 : vector<8x1xf32>
    %109 = vector.broadcast %108 : vector<8x1xf32> to vector<8x32xf32>
    %110 = arith.subf %102, %109 : vector<8x32xf32>
    %111 = arith.mulf %110, %110 : vector<8x32xf32>
    %cst_56 = arith.constant dense<0.000000e+00> : vector<8xf32>
    %112 = vector.multi_reduction <add>, %111, %cst_56 [1] : vector<8x32xf32> to vector<8xf32>
    %113 = vector.shape_cast %112 : vector<8xf32> to vector<8x1xf32>
    %cst_57 = arith.constant 3.200000e+01 : f32
    %114 = vector.broadcast %cst_57 : f32 to vector<8x1xf32>
    %115 = arith.divf %113, %114 : vector<8x1xf32>
    %116 = vector.broadcast %108 : vector<8x1xf32> to vector<8x32xf32>
    %117 = arith.subf %102, %116 : vector<8x32xf32>
    %cst_58 = arith.constant 9.99999974E-6 : f32
    %118 = vector.broadcast %cst_58 : f32 to vector<8x1xf32>
    %119 = arith.addf %115, %118 : vector<8x1xf32>
    %120 = math.rsqrt %119 : vector<8x1xf32>
    %121 = vector.broadcast %120 : vector<8x1xf32> to vector<8x32xf32>
    %122 = arith.mulf %117, %121 : vector<8x32xf32>
    %123 = vector.broadcast %103 : vector<1x32xf32> to vector<8x32xf32>
    %124 = arith.mulf %122, %123 : vector<8x32xf32>
    %125 = vector.broadcast %104 : vector<1x32xf32> to vector<8x32xf32>
    %126 = arith.addf %124, %125 : vector<8x32xf32>
    %127 = arith.truncf %126 : vector<8x32xf32> to vector<8x32xbf16>
    %c0_59 = arith.constant 0 : index
    %c0_60 = arith.constant 0 : index
    %128 = vector.load %arg12[%c0_59, %c0_60] : memref<32x64xbf16, #tpu.memory_space<vmem>>, vector<32x64xbf16>
    %cst_61 = arith.constant dense<0.000000e+00> : vector<8x64xf32>
    %129 = tpu.matmul %127, %128, %cst_61 {dimension_numbers = #tpu.dot_dimension_numbers<[1], [0], [0], [1], [0, 0, 1, 1], [], []>} : vector<8x32xbf16>, vector<32x64xbf16>, vector<8x64xf32> -> vector<8x64xf32>
    %c0_62 = arith.constant 0 : index
    %c0_63 = arith.constant 0 : index
    %130 = vector.load %arg13[%c0_62, %c0_63] : memref<1x64xf32, #tpu.memory_space<vmem>>, vector<1x64xf32>
    %131 = vector.broadcast %130 : vector<1x64xf32> to vector<8x64xf32>
    %132 = arith.addf %129, %131 : vector<8x64xf32>
    %cst_64 = arith.constant 0.000000e+00 : f32
    %133 = vector.broadcast %cst_64 : f32 to vector<8x64xf32>
    %134 = arith.maximumf %132, %133 : vector<8x64xf32>
    %135 = arith.truncf %134 : vector<8x64xf32> to vector<8x64xbf16>
    %c0_65 = arith.constant 0 : index
    %c0_66 = arith.constant 0 : index
    %136 = vector.load %arg14[%c0_65, %c0_66] : memref<64x32xbf16, #tpu.memory_space<vmem>>, vector<64x32xbf16>
    %cst_67 = arith.constant dense<0.000000e+00> : vector<8x32xf32>
    %137 = tpu.matmul %135, %136, %cst_67 {dimension_numbers = #tpu.dot_dimension_numbers<[1], [0], [0], [1], [0, 0, 1, 1], [], []>} : vector<8x64xbf16>, vector<64x32xbf16>, vector<8x32xf32> -> vector<8x32xf32>
    %c0_68 = arith.constant 0 : index
    %c0_69 = arith.constant 0 : index
    %138 = vector.load %arg15[%c0_68, %c0_69] : memref<1x32xf32, #tpu.memory_space<vmem>>, vector<1x32xf32>
    %139 = vector.broadcast %138 : vector<1x32xf32> to vector<8x32xf32>
    %140 = arith.addf %137, %139 : vector<8x32xf32>
    %141 = arith.addf %140, %126 : vector<8x32xf32>
    %c0_70 = arith.constant 0 : index
    %c0_71 = arith.constant 0 : index
    %142 = vector.load %arg16[%c0_70, %c0_71] : memref<1x32xf32, #tpu.memory_space<vmem>>, vector<1x32xf32>
    %c0_72 = arith.constant 0 : index
    %c0_73 = arith.constant 0 : index
    %143 = vector.load %arg17[%c0_72, %c0_73] : memref<1x32xf32, #tpu.memory_space<vmem>>, vector<1x32xf32>
    %cst_74 = arith.constant dense<0.000000e+00> : vector<8xf32>
    %144 = vector.multi_reduction <add>, %141, %cst_74 [1] : vector<8x32xf32> to vector<8xf32>
    %145 = vector.shape_cast %144 : vector<8xf32> to vector<8x1xf32>
    %cst_75 = arith.constant 3.200000e+01 : f32
    %146 = vector.broadcast %cst_75 : f32 to vector<8x1xf32>
    %147 = arith.divf %145, %146 : vector<8x1xf32>
    %148 = vector.broadcast %147 : vector<8x1xf32> to vector<8x32xf32>
    %149 = arith.subf %141, %148 : vector<8x32xf32>
    %150 = arith.mulf %149, %149 : vector<8x32xf32>
    %cst_76 = arith.constant dense<0.000000e+00> : vector<8xf32>
    %151 = vector.multi_reduction <add>, %150, %cst_76 [1] : vector<8x32xf32> to vector<8xf32>
    %152 = vector.shape_cast %151 : vector<8xf32> to vector<8x1xf32>
    %cst_77 = arith.constant 3.200000e+01 : f32
    %153 = vector.broadcast %cst_77 : f32 to vector<8x1xf32>
    %154 = arith.divf %152, %153 : vector<8x1xf32>
    %155 = vector.broadcast %147 : vector<8x1xf32> to vector<8x32xf32>
    %156 = arith.subf %141, %155 : vector<8x32xf32>
    %cst_78 = arith.constant 9.99999974E-6 : f32
    %157 = vector.broadcast %cst_78 : f32 to vector<8x1xf32>
    %158 = arith.addf %154, %157 : vector<8x1xf32>
    %159 = math.rsqrt %158 : vector<8x1xf32>
    %160 = vector.broadcast %159 : vector<8x1xf32> to vector<8x32xf32>
    %161 = arith.mulf %156, %160 : vector<8x32xf32>
    %162 = vector.broadcast %142 : vector<1x32xf32> to vector<8x32xf32>
    %163 = arith.mulf %161, %162 : vector<8x32xf32>
    %164 = vector.broadcast %143 : vector<1x32xf32> to vector<8x32xf32>
    %165 = arith.addf %163, %164 : vector<8x32xf32>
    %166 = vector.shape_cast %165 : vector<8x32xf32> to vector<1x8x32xf32>
    %c0_79 = arith.constant 0 : index
    %c0_80 = arith.constant 0 : index
    %c0_81 = arith.constant 0 : index
    %167 = vector.load %arg18[%c0_79, %c0_80, %c0_81] : memref<1x8x32xf32, #tpu.memory_space<vmem>>, vector<1x8x32xf32>
    tpu.vector_store %arg18[%c0_79, %c0_80, %c0_81], %166 {strides = array<i32>} : memref<1x8x32xf32, #tpu.memory_space<vmem>>, vector<1x8x32xf32>,
    return
  }
  func.func @transform_0(%arg0: i32) -> (i32, i32, i32) {
    %c0_i32 = arith.constant 0 : i32
    %c0_i32_0 = arith.constant 0 : i32
    %c0_i32_1 = arith.constant 0 : i32
    return %arg0, %c0_i32, %c0_i32_0 : i32, i32, i32
  }
  func.func @transform_1(%arg0: i32) -> (i32, i32) {
    %c0_i32 = arith.constant 0 : i32
    %c0_i32_0 = arith.constant 0 : i32
    %c0_i32_1 = arith.constant 0 : i32
    return %c0_i32, %c0_i32_0 : i32, i32
  }
  func.func @transform_2(%arg0: i32) -> (i32, i32) {
    %c0_i32 = arith.constant 0 : i32
    %c0_i32_0 = arith.constant 0 : i32
    %c0_i32_1 = arith.constant 0 : i32
    return %c0_i32, %c0_i32_0 : i32, i32
  }
  func.func @transform_3(%arg0: i32) -> (i32, i32) {
    %c0_i32 = arith.constant 0 : i32
    %c0_i32_0 = arith.constant 0 : i32
    %c0_i32_1 = arith.constant 0 : i32
    return %c0_i32, %c0_i32_0 : i32, i32
  }
  func.func @transform_4(%arg0: i32) -> (i32, i32) {
    %c0_i32 = arith.constant 0 : i32
    %c0_i32_0 = arith.constant 0 : i32
    %c0_i32_1 = arith.constant 0 : i32
    return %c0_i32, %c0_i32_0 : i32, i32
  }
  func.func @transform_5(%arg0: i32) -> (i32, i32) {
    %c0_i32 = arith.constant 0 : i32
    %c0_i32_0 = arith.constant 0 : i32
    %c0_i32_1 = arith.constant 0 : i32
    return %c0_i32, %c0_i32_0 : i32, i32
  }
  func.func @transform_6(%arg0: i32) -> (i32, i32) {
    %c0_i32 = arith.constant 0 : i32
    %c0_i32_0 = arith.constant 0 : i32
    %c0_i32_1 = arith.constant 0 : i32
    return %c0_i32, %c0_i32_0 : i32, i32
  }
  func.func @transform_7(%arg0: i32) -> (i32, i32) {
    %c0_i32 = arith.constant 0 : i32
    %c0_i32_0 = arith.constant 0 : i32
    %c0_i32_1 = arith.constant 0 : i32
    return %c0_i32, %c0_i32_0 : i32, i32
  }
  func.func @transform_8(%arg0: i32) -> (i32, i32) {
    %c0_i32 = arith.constant 0 : i32
    %c0_i32_0 = arith.constant 0 : i32
    %c0_i32_1 = arith.constant 0 : i32
    return %c0_i32, %c0_i32_0 : i32, i32
  }
  func.func @transform_9(%arg0: i32) -> (i32, i32) {
    %c0_i32 = arith.constant 0 : i32
    %c0_i32_0 = arith.constant 0 : i32
    %c0_i32_1 = arith.constant 0 : i32
    return %c0_i32, %c0_i32_0 : i32, i32
  }
  func.func @transform_10(%arg0: i32) -> (i32, i32) {
    %c0_i32 = arith.constant 0 : i32
    %c0_i32_0 = arith.constant 0 : i32
    %c0_i32_1 = arith.constant 0 : i32
    return %c0_i32, %c0_i32_0 : i32, i32
  }
  func.func @transform_11(%arg0: i32) -> (i32, i32) {
    %c0_i32 = arith.constant 0 : i32
    %c0_i32_0 = arith.constant 0 : i32
    %c0_i32_1 = arith.constant 0 : i32
    return %c0_i32, %c0_i32_0 : i32, i32
  }
  func.func @transform_12(%arg0: i32) -> (i32, i32) {
    %c0_i32 = arith.constant 0 : i32
    %c0_i32_0 = arith.constant 0 : i32
    %c0_i32_1 = arith.constant 0 : i32
    return %c0_i32, %c0_i32_0 : i32, i32
  }
  func.func @transform_13(%arg0: i32) -> (i32, i32) {
    %c0_i32 = arith.constant 0 : i32
    %c0_i32_0 = arith.constant 0 : i32
    %c0_i32_1 = arith.constant 0 : i32
    return %c0_i32, %c0_i32_0 : i32, i32
  }
  func.func @transform_14(%arg0: i32) -> (i32, i32) {
    %c0_i32 = arith.constant 0 : i32
    %c0_i32_0 = arith.constant 0 : i32
    %c0_i32_1 = arith.constant 0 : i32
    return %c0_i32, %c0_i32_0 : i32, i32
  }
  func.func @transform_15(%arg0: i32) -> (i32, i32) {
    %c0_i32 = arith.constant 0 : i32
    %c0_i32_0 = arith.constant 0 : i32
    %c0_i32_1 = arith.constant 0 : i32
    return %c0_i32, %c0_i32_0 : i32, i32
  }
  func.func @transform_16(%arg0: i32) -> (i32, i32) {
    %c0_i32 = arith.constant 0 : i32
    %c0_i32_0 = arith.constant 0 : i32
    %c0_i32_1 = arith.constant 0 : i32
    return %c0_i32, %c0_i32_0 : i32, i32
  }
  func.func @transform_17(%arg0: i32) -> (i32, i32, i32) {
    %c0_i32 = arith.constant 0 : i32
    %c0_i32_0 = arith.constant 0 : i32
    %c0_i32_1 = arith.constant 0 : i32
    return %arg0, %c0_i32, %c0_i32_0 : i32, i32, i32
  }
}

</mosaic_0001>

<bundles_post_ra>
// kernel: tpu_custom_call.1
= control target key start
LH: loop header
LB: loop body
LE: loop exit
PB: predicated region body
PF: predicated region fallthrough
CT: control target
= control target key end

     0   :  { %s2712_s0 = inlined_call_operand.vmem [shape: f32[2,8,32], index: 0, kind: input, shape index: {}]   ;;  %s2713_s1 = inlined_call_operand.vmem [shape: bf16[32,32], index: 1, kind: input, shape index: {}]   ;;  %s2714_s2 = inlined_call_operand.vmem [shape: f32[1,32], index: 2, kind: input, shape index: {}]   ;;  %s2715_s3 = inlined_call_operand.vmem [shape: bf16[32,32], index: 3, kind: input, shape index: {}]   ;;  %s2716_s4 = inlined_call_operand.vmem [shape: f32[1,32], index: 4, kind: input, shape index: {}]   ;;  %s2717_s5 = inlined_call_operand.hbm [shape: bf16[32,32], index: 5, kind: input, shape index: {}]   ;;  %s2718_s6 = inlined_call_operand.hbm [shape: f32[1,32], index: 6, kind: input, shape index: {}]   ;;  %s2719_s7 = inlined_call_operand.hbm [shape: bf16[32,32], index: 7, kind: input, shape index: {}]   ;;  %s2720_s8 = inlined_call_operand.hbm [shape: f32[1,32], index: 8, kind: input, shape index: {}]   ;;  %s2721_s9 = inlined_call_operand.hbm [shape: f32[1,32], index: 9, kind: input, shape index: {}]   ;;  %s2722_s10 = inlined_call_operand.vmem [shape: f32[1,32], index: 10, kind: input, shape index: {}]   ;;  %s2723_s11 = inlined_call_operand.vmem [shape: bf16[32,64], index: 11, kind: input, shape index: {}]   ;;  %s2724_s12 = inlined_call_operand.vmem [shape: f32[1,64], index: 12, kind: input, shape index: {}]   ;;  %s2725_s13 = inlined_call_operand.vmem [shape: bf16[64,32], index: 13, kind: input, shape index: {}]   ;;  %s2726_s14 = inlined_call_operand.vmem [shape: f32[1,32], index: 14, kind: input, shape index: {}]   ;;  %s2727_s15 = inlined_call_operand.vmem [shape: f32[1,32], index: 15, kind: input, shape index: {}]   ;;  %s2728_s16 = inlined_call_operand.vmem [shape: f32[1,32], index: 16, kind: input, shape index: {}]   ;;  %s2729_s17 = inlined_call_operand.hbm [shape: f32[2,8,32], index: 17, kind: output, shape index: {}]  }
   0x1   :  { %2744 = sst [smem:[#allocation25_spill]] %s2712_s0 }
   0x2   :  { %2745 = sst [smem:[#allocation26_spill]] %s2713_s1 }
   0x3   :  { %2746 = sst [smem:[#allocation27_spill]] %s2718_s6 }
   0x4   :  { %2747 = sst [smem:[#allocation28_spill]] %s2720_s8 }
   0x5   :  { %2748 = sst [smem:[#allocation29_spill]] %s2727_s15 }
   0x6   :  { %2749 = sst [smem:[#allocation30_spill]] %s2728_s16 }
   0x7   :  { %2750 = sst [smem:[#allocation31_spill]] %s2729_s17 }
   0x8   :  { %22 = vsyncpa [#allocation4], 0 }
   0x9   :  { %23 = vsyncpa [#allocation7], 0 }
   0xa   :  { %24 = vsyncpa [#allocation10], 0 }
   0xb   :  { %25 = vsyncpa [#allocation5], 0 }
   0xc   :  { %27 = vsyncpa [#allocation5 + $0x1], 0  ;;  %s2324_s24 = smov 0   ;;  %s2326_s25 = smov 0  }
   0xd   :  { %s2328_s26 = smov 0   ;;  %s2330_s27 = smov 0  }
   0xe LB: > { %2751 = sst [smem:[#allocation17_spill]] %s2204_s24  ;;  %s2345_s28 = sadd.s32 4294967295, %s2216_s27   ;;  %s2216_s27 = sphi %s2330_s27, %s2785_s27   ;;  %s2212_s26 = sphi %s2328_s26, %s2788_s26   ;;  %s2208_s25 = sphi %s2326_s25, %s2787_s25   ;;  %s2204_s24 = sphi %s2324_s24, %s2786_s24  }
   0xf   : > { %2752 = sst [smem:[#allocation18_spill]] %s2208_s25  ;;  %s1674_s29 = sadd.s32 4294967294, %s2216_s27  }
  0x10   : > { %2753 = sst [smem:[#allocation19_spill]] %s2212_s26  ;;  %s2349_s0 = sadd.s32 1, %s2216_s27  }
  0x11   : > { %2754 = sst [smem:[#allocation20_spill]] %s2216_s27  ;;  %s402_s30 = sadd.s32 1, %s2212_s26 }
  0x12   : > { %2755 = sst [smem:[#allocation21_spill]] %s2349_s0  ;;  %s399_s18 = ssub.s32 %s2216_s27, %s2349_s0 }
  0x13   : > { %p412_p0 = scmp.ne.s32.totalorder %s2212_s26, %s2208_s25  ;;  %p400_p1 = scmp.eq.s32.totalorder %s399_s18, 0 }
  0x14   : > { %p413_p2 = scmp.eq.s32.totalorder %s2345_s28, 1  ;;  %p418_p3 = scmp.ne.s32.totalorder %s2208_s25, %s2204_s24 }
  0x15   : > { %p419_p4 = scmp.eq.s32.totalorder %s1674_s29, 1  ;;  %p1675_p7 = scmp.ge.s32.totalorder %s2216_s27, 1 }
  0x16   : > { %s2360_s19 = scalar_select %p400_p1, %s2212_s26, %s402_s30  }
  0x17   : > { %p2362_p5 = por %p413_p2, %p412_p0  ;;  %p2366_p6 = por %p419_p4, %p418_p3 }
  0x18   : > { %2756 = sst [smem:[#allocation22_spill]] %s2360_s19  ;;  %p426_p8 = scmp.lt.s32.totalorder %s2216_s27, 3 }
  0x19   : > { %s2757_s1 = scalar_select %p2362_p5, 1, 0 }
  0x1a   : > { %s2759_s20 = scalar_select %p2366_p6, 1, 0 }
  0x1b   : > { %2758 = sst [smem:[#allocation23_spill]] %s2757_s1  ;;  %p2738_p9 = scmp.eq.s32.totalorder %s2345_s28, 0 }
  0x1c   : > { %2760 = sst [smem:[#allocation24_spill]] %s2759_s20  ;;  %p2373_p10 = pnand %p1675_p7, %p426_p8 }
  0x1d   : > { %s2218_s22 = smov [#allocation6]   ;;  %s2219_s29 = smov [#allocation9]  }
  0x1e   : > { %s2761_s21 = scalar_select %p2373_p10, 1, 0 }
  0x1f   : > { %s464_s23 = sshll.u32 %s2218_s22, 4  ;;  %p1890_p11 = pneg %p2373_p10  ;;  %s465_s23 = int_to_ptr.vmem [resolvable:$true] %s464_s23 }
  0x20   : > { %s488_s30 = sshll.u32 %s2219_s29, 4  ;;  %s2220_s19 = smov [#allocation3]   ;;  %s2385_s30 = int_to_ptr.vmem [resolvable:$true] %s488_s30 }
  0x21   : > { %p2381_p12 = pnand %p2738_p9, %p1890_p11  ;;  %s450_s26 = sshll.u32 %s2220_s19, 4  ;;  %s2387_s26 = int_to_ptr.vmem [resolvable:$true] %s450_s26 }
  0x22   : > { %s2763_s6 = sld [smem:[#allocation27_spill]] }
  0x23   : > { %p2397_p0 = pneg %p2381_p12 }
  0x28   : > { %s2002_s22 = scalar_lea.hbm %s2763_s6, 16 }
  0x29   : > { %p2003_p13 = scmp.ne.s32.totalorder %s2763_s6, %s2002_s22  ;;  %p2009_p3 = scmp.lt.u32.totalorder %s2002_s22, %s2763_s6 }
  0x2b   : > { %p2005_p1 = pnand %p2397_p0, %p2003_p13 }
  0x2d   : > { %p2006_p2 = pneg %p2005_p1 }
  0x2f   : > { %p2011_p4 = pnand %p2009_p3, %p2006_p2 }
  0x31   : > { %2014 = shalt.err (!%p2011_p4)
}
  0x32   : > { %s2015_s0 = scalar_lea.vmem %s465_s23, 16  ;;  %s2022_s24 = scalar_lea.vmem %s465_s23, 32 }
  0x33   : > { %p2016_p7 = scmp.ne.s32.totalorder %s465_s23, %s2015_s0  ;;  %p2023_p9 = scmp.lt.s32.totalorder %s465_s23, %s465_s23 }
  0x34   : > { %p2024_p6 = scmp.lt.s32.totalorder %s2022_s24, %s2015_s0 }
  0x35   : > { %p2018_p8 = pnand %p2016_p7, %p2397_p0 }
  0x36   : > { %p2025_p5 = por %p2024_p6, %p2023_p9 }
  0x37   : > { %p2019_p11 = pneg %p2018_p8 }
  0x39   : > { %p2026_p10 = pnand %p2025_p5, %p2019_p11 }
  0x3b   : > { %2029 = shalt.err (!%p2026_p10)
}
  0x3c   : > { %1896 = dma.hbm_to_vmem [thread:$0]  (!%p2381_p12), %s2763_s6, 16, %s465_s23, [#allocation7]  }
  0x3d   : > { %s2765_s8 = sld [smem:[#allocation28_spill]] }
  0x43   : > { %s2030_s19 = scalar_lea.hbm %s2765_s8, 16 }
  0x44   : > { %p2031_p13 = scmp.ne.s32.totalorder %s2765_s8, %s2030_s19  ;;  %p2037_p5 = scmp.lt.u32.totalorder %s2030_s19, %s2765_s8 }
  0x46   : > { %p2033_p1 = pnand %p2031_p13, %p2397_p0 }
  0x48   : > { %p2034_p6 = pneg %p2033_p1 }
  0x4a   : > { %p2039_p9 = pnand %p2037_p5, %p2034_p6 }
  0x4c   : > { %2042 = shalt.err (!%p2039_p9)
}
  0x4d   : > { %s2043_s23 = scalar_lea.vmem %s2385_s30, 16  ;;  %s2050_s15 = scalar_lea.vmem %s2385_s30, 32 }
  0x4e   : > { %p2044_p10 = scmp.ne.s32.totalorder %s2385_s30, %s2043_s23  ;;  %p2051_p4 = scmp.lt.s32.totalorder %s2385_s30, %s2385_s30 }
  0x4f   : > { %p2052_p7 = scmp.lt.s32.totalorder %s2050_s15, %s2043_s23 }
  0x50   : > { %p2046_p2 = pnand %p2044_p10, %p2397_p0 }
  0x51   : > { %p2053_p8 = por %p2052_p7, %p2051_p4 }
  0x52   : > { %p2047_p3 = pneg %p2046_p2 }
  0x54   : > { %p2054_p11 = pnand %p2053_p8, %p2047_p3 }
  0x56   : > { %2057 = shalt.err (!%p2054_p11)
}
  0x57   : > { %1902 = dma.hbm_to_vmem [thread:$0]  (!%p2381_p12), %s2765_s8, 16, %s2385_s30, [#allocation10]  }
  0x58   : > { %s2058_s22 = scalar_lea.hbm %s2717_s5, 256 }
  0x59   : > { %p2059_p13 = scmp.ne.s32.totalorder %s2717_s5, %s2058_s22  ;;  %p2065_p5 = scmp.lt.u32.totalorder %s2058_s22, %s2717_s5 }
  0x5b   : > { %p2061_p1 = pnand %p2059_p13, %p2397_p0 }
  0x5d   : > { %p2062_p6 = pneg %p2061_p1 }
  0x5f   : > { %p2067_p9 = pnand %p2065_p5, %p2062_p6 }
  0x61   : > { %2070 = shalt.err (!%p2067_p9)
}
  0x62   : > { %s2071_s30 = scalar_lea.vmem %s2387_s26, 256  ;;  %p2079_p4 = scmp.lt.s32.totalorder %s2387_s26, %s2387_s26 }
  0x63   : > { %p2072_p10 = scmp.ne.s32.totalorder %s2387_s26, %s2071_s30  ;;  %p2080_p7 = scmp.lt.s32.totalorder %s2071_s30, %s2071_s30 }
  0x65   : > { %p2074_p2 = pnand %p2072_p10, %p2397_p0  ;;  %p2081_p8 = por %p2080_p7, %p2079_p4 }
  0x67   : > { %p2075_p3 = pneg %p2074_p2 }
  0x69   : > { %p2082_p11 = pnand %p2081_p8, %p2075_p3 }
  0x6b   : > { %2085 = shalt.err (!%p2082_p11)
}
  0x6c   : > { %s2221_s15 = smov 64   ;;  %s2222_s16 = smov 4  }
  0x6d   : > { %1893 = dma.hbm_to_vmem [thread:$0]  (!%p2381_p12), %s2717_s5, 256, %s2387_s26, [#allocation4], %s2221_s15, %s2221_s15, %s2222_s16  }
  0x6e   : > { %s2223_s17 = smov [#allocation8]   ;;  %s2224_s19 = smov [#allocation11]  }
  0x6f   : > { %s474_s22 = sshll.u32 %s2223_s17, 4  ;;  %s499_s0 = sshll.u32 %s2224_s19, 4  ;;  %s475_s22 = int_to_ptr.vmem [resolvable:$true] %s474_s22  ;;  %s500_s0 = int_to_ptr.vmem [resolvable:$true] %s499_s0 }
  0x70   : > { %s2086_s30 = scalar_lea.hbm %s2719_s7, 256 }
  0x71   : > { %p2087_p13 = scmp.ne.s32.totalorder %s2719_s7, %s2086_s30  ;;  %p2093_p5 = scmp.lt.u32.totalorder %s2086_s30, %s2719_s7 }
  0x73   : > { %p2089_p1 = pnand %p2087_p13, %p2397_p0 }
  0x75   : > { %p2090_p6 = pneg %p2089_p1 }
  0x77   : > { %p2095_p9 = pnand %p2093_p5, %p2090_p6 }
  0x79   : > { %2098 = shalt.err (!%p2095_p9)
}
  0x7a   : > { %s2099_s26 = scalar_lea.vmem %s475_s22, 256  ;;  %p2107_p4 = scmp.lt.s32.totalorder %s475_s22, %s475_s22 }
  0x7b   : > { %p2100_p10 = scmp.ne.s32.totalorder %s475_s22, %s2099_s26  ;;  %p2108_p7 = scmp.lt.s32.totalorder %s2099_s26, %s2099_s26 }
  0x7d   : > { %p2102_p2 = pnand %p2100_p10, %p2397_p0  ;;  %p2109_p8 = por %p2108_p7, %p2107_p4 }
  0x7f   : > { %p2103_p3 = pneg %p2102_p2 }
  0x81   : > { %p2110_p11 = pnand %p2109_p8, %p2103_p3 }
  0x83   : > { %2113 = shalt.err (!%p2110_p11)
}
  0x84   : > { %1899 = dma.hbm_to_vmem [thread:$0]  (!%p2381_p12), %s2719_s7, 256, %s475_s22, [#allocation7], %s2221_s15, %s2221_s15, %s2222_s16  }
  0x85   : > { %s2114_s27 = scalar_lea.hbm %s2721_s9, 16 }
  0x86   : > { %p2115_p13 = scmp.ne.s32.totalorder %s2721_s9, %s2114_s27  ;;  %p2121_p5 = scmp.lt.u32.totalorder %s2114_s27, %s2721_s9 }
  0x88   : > { %p2117_p1 = pnand %p2115_p13, %p2397_p0 }
  0x8a   : > { %p2118_p6 = pneg %p2117_p1 }
  0x8c   : > { %p2123_p9 = pnand %p2121_p5, %p2118_p6 }
  0x8e   : > { %2126 = shalt.err (!%p2123_p9)
}
  0x8f   : > { %s2127_s23 = scalar_lea.vmem %s500_s0, 16  ;;  %s2134_s15 = scalar_lea.vmem %s500_s0, 32 }
  0x90   : > { %p2128_p10 = scmp.ne.s32.totalorder %s500_s0, %s2127_s23  ;;  %p2135_p4 = scmp.lt.s32.totalorder %s500_s0, %s500_s0 }
  0x91   : > { %p2136_p7 = scmp.lt.s32.totalorder %s2134_s15, %s2127_s23 }
  0x92   : > { %p2130_p2 = pnand %p2128_p10, %p2397_p0 }
  0x93   : > { %p2137_p8 = por %p2136_p7, %p2135_p4 }
  0x94   : > { %p2131_p3 = pneg %p2130_p2 }
  0x96   : > { %p2138_p11 = pnand %p2137_p8, %p2131_p3 }
  0x98   : > { %2141 = shalt.err (!%p2138_p11)
}
  0x99   : > { %1905 = dma.hbm_to_vmem [thread:$0]  (!%p2381_p12), %s2721_s9, 16, %s500_s0, [#allocation10]  }
  0x9a   : > { %p2766_p13 = scmp.ne.s32.totalorder %s2761_s21, 0 }
  0x9b   : > { %p2767_p1 = scmp.eq.s32.totalorder (!%p2766_p13), %s2345_s28, 0 }
  0x9c   : > { %540 = sbr.rel (%p2766_p13) target bundleno = 2695 (0xa87), region = 88 }
  0xa3   : > { %2187 = dma.done.wait (%p2767_p1), [#allocation4], 256   ;;  %p2768_p0 = pmov %p2767_p1 }
  0xa5   : > { %2189 = vsyncadd (%p2768_p0), [#allocation4], 4294967040  ;;  %p2769_p6 = pmov %p2768_p0 }
  0xa6   : > { %p2770_p5 = pmov %p2768_p0 }
  0xa7   : > { %2191 = dma.done.wait (%p2769_p6), [#allocation7], 272  }
  0xa8   : > { %2193 = vsyncadd (%p2770_p5), [#allocation7], 4294967024  ;;  %p2771_p9 = pmov %p2768_p0 }
  0xa9   : > { %p2772_p12 = pmov %p2768_p0 }
  0xaa   : > { %2195 = dma.done.wait (%p2771_p9), [#allocation10], 32  }
  0xab   : > { %2197 = vsyncadd (%p2772_p12), [#allocation10], 4294967264  ;;  %p607_p10 = scmp.lt.s32.totalorder %s2345_s28, 1  ;;  %v2225_v0 = vmov 0.0   ;;  %vm2226_vm0 = vmmov 0   ;;  %v1968_v1 = vld [vmem:[%s2715_s3] sm:$0xff]  }
  0xac   : > { %1776 = vmatprep.subr.bf16.mxu1 %v2225_v0  ;;  %1768 = vmatprep.subr.bf16.mxu0 %v2225_v0  ;;  %s2773_s6 = sld [smem:[#allocation26_spill]]  ;;  %s2774_s1 = sld [smem:[#allocation25_spill]]  ;;  %v1970_v3 = vld [vmem:[%s2715_s3 + $0x8] sm:$0xff]   ;;  %vm637_vm1 = vcmask 261120   ;;  %v1694_v7 = vld [vmem:[%s2716_s4] ss:$0 sm:$0xff] }
  0xad   : > { %1780 = vmatprep.mubr.msk.bf16.mxu1 %vm2226_vm0, %v2225_v0  ;;  %s608_s21 = scalar_select %p607_p10, %s2345_s28, 1  ;;  %1772 = vmatprep.mubr.msk.bf16.mxu0 %vm2226_vm0, %v2225_v0  ;;  %v1690_v8 = vld [vmem:[%s2714_s2] ss:$0 sm:$0xff]  ;;  %vm811_vm2 = vcmask 64512   ;;  %v1972_v23 = vld [vmem:[#allocation3] sm:$0xff]   ;;  %v1973_v24 = vld [vmem:[#allocation3 + $0x8] sm:$0xff]  }
  0xae   : > { %1777 = vmatpush3.bf16.msra.mxu1 %v1968_v1  ;;  %s2229_s29 = smov 104   ;;  %v1698_v39 = vld [vmem:[#allocation6] ss:$0 sm:$0xff]  ;;  %vm873_vm3 = vcmask 1043456   ;;  %s2230_s0 = smov 8   ;;  %vm1035_vm4 = vcmask 130112  }
  0xaf   : > { %s1689_s18 = sshll.u32 %s608_s21, 3  ;;  %1778 = vmatprep.subr.bf16.mxu1 %v2225_v0  ;;  %s2227_s21 = smov 112   ;;  %vm1151_vm5 = vcmask 195712   ;;  %vm1267_vm6 = vcmask 261312   ;;  %vm1476_vm7 = vcmask 523264  }
  0xb0   : > { %s2231_s30 = smov 16   ;;  %s2232_s26 = smov 24  }
  0xb1   : > { %s2775_s8 = sld [smem:[#allocation18_spill]]  ;;  %s2777_s19 = sld [smem:[#allocation29_spill]] }
  0xb2   : > { %v1969_v2 = vld [vmem:[%s2773_s6] sm:$0xff]   ;;  %s610_s27 = scalar_lea.vmem %s2774_s1, %s1689_s18  ;;  %v1971_v4 = vld [vmem:[%s2773_s6 + $0x8] sm:$0xff]   ;;  %1779 = vmatpush3.bf16.msra.mxu1 %v1970_v3  ;;  %s2228_s18 = smov 120  }
  0xb3   : > { %1769 = vmatpush3.bf16.msra.mxu0 %v1969_v2  ;;  %v2535_v5 = vld [vmem:[%s610_s27] sm:$0xff]  ;;  %1792 = vmatprep.subr.bf16.mxu1 %v2225_v0  ;;  %s2776_s27 = sld [smem:[#allocation23_spill]]  ;;  %s1729_s16 = sshll.u32 %s2345_s28, 7 }
  0xb4   : > { %1770 = vmatprep.subr.bf16.mxu0 %v2225_v0  ;;  %v613_v6 = vpack.c.bf16 %v2535_v5, %v2535_v5  ;;  %s2778_s15 = sld [smem:[#allocation30_spill]]  ;;  %s2233_s28 = smov [#allocation12]  }
  0xb6   : > { %1781 = vmatmul.mubr.msk.bf16.vlgmr.msra.gmra.mrb[0].mxu1 %vm637_vm1, %v613_v6 }
  0xb7   : > { %1771 = vmatpush3.bf16.msra.mxu0 %v1971_v4  ;;  %1794 = vmatprep.mubr.msk.bf16.mxu1 %vm2226_vm0, %v2225_v0  ;;  %s604_s25 = sand.u32 1, %s2775_s8  }
  0xb8   : > { %1784 = vmatprep.subr.bf16.mxu0 %v2225_v0  ;;  %s1688_s1 = sshll.u32 %s604_s25, 3 }
  0xb9   : > { %s606_s22 = scalar_lea.vmem [#allocation12], %s1688_s1  ;;  %p2780_p3 = scmp.ne.s32.totalorder %s2776_s27, 0 }
  0xba   : > { %1773 = vmatmul.mubr.msk.bf16.vlgmr.msra.gmra.mrb[0].mxu0 %vm637_vm1, %v613_v6  ;;  %s2146_s1 = sshll.u32 %s2233_s28, 4  ;;  %s2147_s1 = int_to_ptr.vmem [resolvable:$false] %s2146_s1 }
  0xbb   : > { %1788 = vmatprep.mubr.msk.bf16.mxu0 %vm2226_vm0, %v2225_v0  ;;  %1785 = vmatpush3.bf16.msra.mxu0 %v1972_v23  ;;  %s2148_s20 = scalar_lea.vmem %s2147_s1, 256 }
  0xbc   : > { %1786 = vmatprep.subr.bf16.mxu0 %v2225_v0 }
  0xbf   : > { %1787 = vmatpush3.bf16.msra.mxu0 %v1973_v24 }
  0xc0   : > { %1798 = vmatprep.subr.bf16.mxu0 %v2225_v0 }
  0xc2   : > { %1789 = vmatmul.mubr.msk.bf16.vlgmr.msra.gmra.mrb[4].mxu0 %vm637_vm1, %v613_v6 }
  0xc3   : > { %1800 = vmatprep.mubr.msk.bf16.mxu0 %vm2226_vm0, %v2225_v0 }
 0x189   : > { %v738_v9 = vpop.f32.mrb[0].mxu1 }
 0x18a   : > { %v739_v10 = vadd.f32 %v1694_v7, %v738_v9  ;;  %v1782_v11 = vpop.f32.mrb[1].mxu1 }
 0x18b   : > { %v741_v14 = vpop.f32.mrb[2].mxu1 }
 0x18c   : > { %v809_v16 = vpack.c.bf16 %v739_v10, %v739_v10  ;;  %v1783_v17 = vpop.f32.mrb[3].mxu1 }
 0x18d   : > { %v675_v12 = vpop.f32.mrb[0].mxu0 }
 0x18e   : > { %v676_v13 = vadd.f32 %v1690_v8, %v675_v12  ;;  %v1774_v15 = vpop.f32.mrb[1].mxu0  ;;  %1039 = vrot.lane.b32.xlu1 %v809_v16, %s2227_s21  ;;  %922 = vrot.lane.b32.xlu0 %v809_v16, %s2228_s18  ;;  %v816_v21 = vsel %vm811_vm2, %v809_v16, 0 }
 0x18f   : > { %v678_v18 = vpop.f32.mrb[2].mxu0  ;;  %1793 = vmatpush3.bf16.xpose.msra.mxu1 %v816_v21 }
 0x190   : > { %v807_v19 = vmul.f32 0.35355338, %v676_v13  ;;  %v1775_v20 = vpop.f32.mrb[3].mxu0  ;;  %1804 = vmatprep.subr.bf16.mxu1 %v2225_v0 }
 0x192   : > { %v808_v22 = vpack.c.bf16 %v807_v19, %v807_v19 }
 0x194   : > { %1037 = vrot.lane.b32.xlu1 %v808_v22, %s2227_s21  ;;  %919 = vrot.lane.b32.xlu0 %v808_v22, %s2228_s18 }
 0x195   : > { %v801_v40 = vpop.f32.mrb[4].mxu0 }
 0x196   : > { %1795 = vmatmul.mubr.msk.bf16.vlgmr.msra.gmra.mrb[4].mxu1 %vm811_vm2, %v808_v22  ;;  %v802_v41 = vadd.f32 %v1698_v39, %v801_v40  ;;  %v1790_v42 = vpop.f32.mrb[5].mxu0 }
 0x197   : > { %1806 = vmatprep.mubr.msk.bf16.mxu1 %vm2226_vm0, %v2225_v0  ;;  %v804_v43 = vpop.f32.mrb[6].mxu0 }
 0x198   : > { %1153 = vrot.lane.b32.xlu1 %v808_v22, %s2229_s29  ;;  %1155 = vrot.lane.b32.xlu0 %v809_v16, %s2229_s29  ;;  %v810_v44 = vpack.c.bf16 %v802_v41, %v802_v41  ;;  %v1791_v45 = vpop.f32.mrb[7].mxu0 }
 0x19a   : > { %v875_v46 = vsel %vm873_vm3, %v810_v44, 0 }
 0x19b   : > { %1799 = vmatpush3.bf16.msra.mxu0 %v875_v46 }
 0x19c   : > { %1810 = vmatprep.subr.bf16.mxu0 %v2225_v0 }
 0x200   : > { %v923_v25 = vpop.permute.xlu0 %922  ;;  %v1040_v27 = vpop.permute.xlu1 %1039 }
 0x201   : > { %v928_v26 = vsel %vm811_vm2, %v923_v25, 0  ;;  %v1045_v29 = vsel %vm811_vm2, %v1040_v27, 0 }
 0x202   : > { %1805 = vmatpush3.bf16.xpose.msra.mxu1 %v928_v26 }
 0x203   : > { %1816 = vmatprep.subr.bf16.mxu1 %v2225_v0 }
 0x206   : > { %v920_v28 = vpop.permute.xlu0 %919  ;;  %v1038_v31 = vpop.permute.xlu1 %1037 }
 0x209   : > { %1807 = vmatmul.mubr.msk.bf16.vlgmr.msra.gmra.mrb[8].mxu1 %vm811_vm2, %v920_v28 }
 0x20a   : > { %1817 = vmatpush3.bf16.xpose.msra.mxu1 %v1045_v29  ;;  %1818 = vmatprep.mubr.msk.bf16.mxu1 %vm2226_vm0, %v2225_v0  ;;  %v1156_v30 = vpop.permute.xlu0 %1155  ;;  %v1154_v33 = vpop.permute.xlu1 %1153 }
 0x20b   : > { %1828 = vmatprep.subr.bf16.mxu1 %v2225_v0  ;;  %v1161_v32 = vsel %vm811_vm2, %v1156_v30, 0 }
 0x211   : > { %1819 = vmatmul.mubr.msk.bf16.vlgmr.msra.gmra.mrb[12].mxu1 %vm811_vm2, %v1038_v31 }
 0x212   : > { %1829 = vmatpush3.bf16.xpose.msra.mxu1 %v1161_v32  ;;  %1830 = vmatprep.mubr.msk.bf16.mxu1 %vm2226_vm0, %v2225_v0 }
 0x213   : > { %1840 = vmatprep.subr.bf16.mxu1 %v2225_v0 }
 0x219   : > { %1831 = vmatmul.mubr.msk.bf16.vlgmr.msra.gmra.mrb[16].mxu1 %vm811_vm2, %v1154_v33 }
 0x21a   : > { %1844 = vmatprep.mubr.msk.bf16.mxu1 %vm2226_vm0, %v2225_v0 }
 0x269   : > { %v852_v34 = vpop.f32.mrb[4].mxu1 }
 0x26a   : > { %v1796_v35 = vpop.f32.mrb[5].mxu1  ;;  %v858_v36 = vsel %vm811_vm2, %v852_v34, -inf }
 0x26b   : > { %859 = vmax.xlane.f32.xlu0 %v858_v36  ;;  %v855_v37 = vpop.f32.mrb[6].mxu1 }
 0x26c   : > { %v1797_v38 = vpop.f32.mrb[7].mxu1 }
 0x2dc   : > { %v964_v47 = vpop.f32.mrb[8].mxu1 }
 0x2dd   : > { %v1808_v48 = vpop.f32.mrb[9].mxu1  ;;  %v970_v49 = vsel %vm811_vm2, %v964_v47, -inf }
 0x2de   : > { %971 = vmax.xlane.f32.xlu1 %v970_v49  ;;  %v967_v50 = vpop.f32.mrb[10].mxu1 }
 0x2df   : > { %v1809_v51 = vpop.f32.mrb[11].mxu1  ;;  %v1974_v50 = vld [vmem:[#allocation8] sm:$0xff]  }
 0x2e0   : > { %1841 = vmatpush3.bf16.msra.mxu1 %v1974_v50  ;;  %v1975_v51 = vld [vmem:[#allocation8 + $0x8] sm:$0xff]  }
 0x2e1   : > { %1842 = vmatprep.subr.bf16.mxu1 %v2225_v0 }
 0x2e4   : > { %v1081_v52 = vpop.f32.mrb[12].mxu1  ;;  %1843 = vmatpush3.bf16.msra.mxu1 %v1975_v51 }
 0x2e5   : > { %v1820_v53 = vpop.f32.mrb[13].mxu1  ;;  %v1087_v54 = vsel %vm811_vm2, %v1081_v52, -inf  ;;  %1856 = vmatprep.subr.bf16.mxu1 %v2225_v0 }
 0x2e6   : > { %1088 = vmax.xlane.f32.xlu0 %v1087_v54  ;;  %v1084_v55 = vpop.f32.mrb[14].mxu1 }
 0x2e7   : > { %v1821_v56 = vpop.f32.mrb[15].mxu1 }
 0x2ec   : > { %v1197_v57 = vpop.f32.mrb[16].mxu1 }
 0x2ed   : > { %v1832_v58 = vpop.f32.mrb[17].mxu1  ;;  %v1203_v59 = vsel %vm811_vm2, %v1197_v57, -inf }
 0x2ee   : > { %1204 = vmax.xlane.f32.xlu0 %v1203_v59  ;;  %v1200_v60 = vpop.f32.mrb[18].mxu1 }
 0x2ef   : > { %v1833_v61 = vpop.f32.mrb[19].mxu1 }
 0x2f8   : > { %v860_v62 = vpop.xlane.xlu0 %859 }
 0x2f9   : > { %v861_v63 = vsub.f32 %v852_v34, %v860_v62 }
 0x2fb   : > { %v862_v1 = vmul.f32 1.442695, %v861_v63 }
 0x2fd   : > { %1982 = vpow2.f32 %v862_v1 }
 0x307   : > { %v1983_v2 = vpop.eup %1982 }
 0x308   : > { %v864_v3 = vsel %vm811_vm2, %v1983_v2, 0.0 }
 0x309   : > { %865 = vadd.xlane.f32.xlu1 %v864_v3 }
 0x31a   : > { %983 = vrot.lane.b32.xlu1 %v810_v44, %s2228_s18 }
 0x36b   : > { %v972_v4 = vpop.xlane.xlu1 %971 }
 0x36c   : > { %v973_v6 = vsub.f32 %v964_v47, %v972_v4 }
 0x36e   : > { %v974_v7 = vmul.f32 1.442695, %v973_v6 }
 0x370   : > { %1984 = vpow2.f32 %v974_v7 }
 0x373   : > { %v1089_v8 = vpop.xlane.xlu0 %1088 }
 0x374   : > { %v1090_v9 = vsub.f32 %v1081_v52, %v1089_v8 }
 0x376   : > { %v1091_v10 = vmul.f32 1.442695, %v1090_v9 }
 0x378   : > { %1986 = vpow2.f32 %v1091_v10 }
 0x37a   : > { %v1985_v11 = vpop.eup %1984 }
 0x37b   : > { %v1205_v12 = vpop.xlane.xlu0 %1204  ;;  %v976_v13 = vsel %vm811_vm2, %v1985_v11, 0.0 }
 0x37c   : > { %v1206_v14 = vsub.f32 %v1197_v57, %v1205_v12  ;;  %977 = vadd.xlane.f32.xlu0 %v976_v13 }
 0x37e   : > { %v1207_v15 = vmul.f32 1.442695, %v1206_v14 }
 0x380   : > { %1988 = vpow2.f32 %v1207_v15 }
 0x382   : > { %v1987_v16 = vpop.eup %1986 }
 0x383   : > { %v1093_v17 = vsel %vm811_vm2, %v1987_v16, 0.0 }
 0x384   : > { %1094 = vadd.xlane.f32.xlu1 %v1093_v17  ;;  %v1977_v17 = vld [vmem:[%s2723_s11 + $0x8] sm:$0xff]  }
 0x38a   : > { %v1989_v18 = vpop.eup %1988 }
 0x38b   : > { %v1209_v19 = vsel %vm811_vm2, %v1989_v18, 0.0 }
 0x38c   : > { %1210 = vadd.xlane.f32.xlu0 %v1209_v19 }
 0x395   : > { %1215 = vrot.lane.b32.xlu1 %v810_v44, %s2229_s29 }
 0x396   : > { %v866_v20 = vpop.xlane.xlu1 %865 }
 0x397   : > { %1990 = vrcp.f32 %v866_v20 }
 0x39a   : > { %v984_v22 = vpop.permute.xlu1 %983 }
 0x39b   : > { %v989_v25 = vsel %vm873_vm3, %v984_v22, 0 }
 0x3a1   : > { %v1991_v21 = vpop.eup %1990 }
 0x3a2   : > { %1099 = vrot.lane.b32.xlu0 %v810_v44, %s2227_s21  ;;  %v868_v23 = vmul.f32 %v1991_v21, %v1983_v2  ;;  %v1710_v2 = vld [vmem:[#allocation9] ss:$0 sm:$0xff]  ;;  %s1565_s21 = sshll.u32 %s606_s22, 4  ;;  %s2671_s21 = int_to_ptr.vmem [resolvable:$true] %s1565_s21 }
 0x3a3   : > { %s2142_s8 = scalar_lea.vmem %s2671_s21, 128  ;;  %p2149_p8 = scmp.lt.s32.totalorder %s2671_s21, %s2147_s1 }
 0x3a4   : > { %v869_v24 = vpack.c.bf16 %v868_v23, %v868_v23  ;;  %v1714_v23 = vld [vmem:[#allocation11] ss:$0 sm:$0xff]  ;;  %p2143_p2 = scmp.ne.s32.totalorder %s2671_s21, %s2142_s8  ;;  %p2150_p11 = scmp.lt.s32.totalorder %s2148_s20, %s2142_s8 }
 0x3a6   : > { %1801 = vmatmul.mubr.msk.bf16.vlgmr.msra.gmra.mrb[8].mxu0 %vm811_vm2, %v869_v24  ;;  %p2144_p4 = pnand %p2143_p2, %p2780_p3  ;;  %p2151_p13 = por %p2150_p11, %p2149_p8 }
 0x3a7   : > { %1811 = vmatpush3.bf16.msra.mxu0 %v989_v25  ;;  %1812 = vmatprep.mubr.msk.bf16.mxu0 %vm2226_vm0, %v2225_v0  ;;  %v1715_v25 = vld [vmem:[%s2722_s10] ss:$0 sm:$0xff] }
 0x3a8   : > { %1822 = vmatprep.subr.bf16.mxu0 %v2225_v0  ;;  %p2145_p7 = pneg %p2144_p4 }
 0x3aa   : > { %p2152_p1 = pnand %p2151_p13, %p2145_p7 }
 0x409   : > { %v978_v26 = vpop.xlane.xlu0 %977 }
 0x40a   : > { %1992 = vrcp.f32 %v978_v26 }
 0x411   : > { %v1095_v27 = vpop.xlane.xlu1 %1094 }
 0x412   : > { %1994 = vrcp.f32 %v1095_v27 }
 0x414   : > { %v1993_v28 = vpop.eup %1992 }
 0x415   : > { %v980_v29 = vmul.f32 %v1993_v28, %v1985_v11  ;;  %v1216_v36 = vpop.permute.xlu1 %1215 }
 0x416   : > { %v1221_v38 = vsel %vm873_vm3, %v1216_v36, 0 }
 0x417   : > { %v981_v30 = vpack.c.bf16 %v980_v29, %v980_v29  ;;  %v1980_v29 = vld [vmem:[%s2725_s13 + $0x10] sm:$0xff]  }
 0x419   : > { %v1211_v31 = vpop.xlane.xlu0 %1210  ;;  %1813 = vmatmul.mubr.msk.bf16.vlgmr.msra.gmra.mrb[12].mxu0 %vm811_vm2, %v981_v30  ;;  %v1981_v30 = vld [vmem:[%s2725_s13 + $0x18] sm:$0xff]  }
 0x41a   : > { %1996 = vrcp.f32 %v1211_v31  ;;  %1824 = vmatprep.mubr.msk.bf16.mxu0 %vm2226_vm0, %v2225_v0  ;;  %v1716_v31 = vld [vmem:[%s2724_s12] ss:$0 sm:$0xff] }
 0x41c   : > { %v1995_v32 = vpop.eup %1994 }
 0x41d   : > { %v1097_v33 = vmul.f32 %v1995_v32, %v1987_v16  ;;  %v1100_v34 = vpop.permute.xlu0 %1099  ;;  %v1976_v16 = vld [vmem:[%s2723_s11] sm:$0xff]  }
 0x41e   : > { %v1105_v35 = vsel %vm873_vm3, %v1100_v34, 0 }
 0x41f   : > { %1823 = vmatpush3.bf16.msra.mxu0 %v1105_v35  ;;  %v1098_v37 = vpack.c.bf16 %v1097_v33, %v1097_v33 }
 0x420   : > { %1834 = vmatprep.subr.bf16.mxu0 %v2225_v0 }
 0x422   : > { %1825 = vmatmul.mubr.msk.bf16.vlgmr.msra.gmra.mrb[16].mxu0 %vm811_vm2, %v1098_v37 }
 0x423   : > { %1835 = vmatpush3.bf16.msra.mxu0 %v1221_v38  ;;  %1836 = vmatprep.mubr.msk.bf16.mxu0 %vm2226_vm0, %v2225_v0 }
 0x424   : > { %v1997_v39 = vpop.eup %1996  ;;  %1848 = vmatprep.subr.bf16.mxu0 %v2225_v0 }
 0x425   : > { %v1213_v40 = vmul.f32 %v1997_v39, %v1989_v18  ;;  %v1979_v18 = vld [vmem:[%s2725_s13 + $0x8] sm:$0xff]  }
 0x427   : > { %v1214_v41 = vpack.c.bf16 %v1213_v40, %v1213_v40 }
 0x42a   : > { %1837 = vmatmul.mubr.msk.bf16.vlgmr.msra.gmra.mrb[20].mxu0 %vm811_vm2, %v1214_v41 }
 0x42b   : > { %1852 = vmatprep.mubr.msk.bf16.mxu0 %vm2226_vm0, %v2225_v0  ;;  %1849 = vmatpush3.bf16.msra.mxu0 %v1976_v16 }
 0x42c   : > { %1850 = vmatprep.subr.bf16.mxu0 %v2225_v0 }
 0x42f   : > { %1851 = vmatpush3.bf16.msra.mxu0 %v1977_v17 }
 0x479   : > { %v911_v42 = vpop.f32.mrb[8].mxu0 }
 0x47a   : > { %917 = vst.msk [vmem:[#allocation2] sm:$0xff] %vm811_vm2, %v911_v42  ;;  %v1802_v43 = vpop.f32.mrb[9].mxu0 }
 0x47b   : > { %v914_v44 = vpop.f32.mrb[10].mxu0 }
 0x47c   : > { %v1803_v45 = vpop.f32.mrb[11].mxu0 }
 0x4ec   : > { %v1025_v46 = vpop.f32.mrb[12].mxu0 }
 0x4ed   : > { %1032 = vrot.lane.b32.xlu1 %v1025_v46, %s2230_s0  ;;  %v1814_v47 = vpop.f32.mrb[13].mxu0  ;;  %s2779_s0 = sld [smem:[#allocation31_spill]] }
 0x4ee   : > { %v1028_v48 = vpop.f32.mrb[14].mxu0 }
 0x4ef   : > { %v1815_v49 = vpop.f32.mrb[15].mxu0 }
 0x4f5   : > { %v1141_v52 = vpop.f32.mrb[16].mxu0 }
 0x4f6   : > { %1148 = vrot.lane.b32.xlu0 %v1141_v52, %s2231_s30  ;;  %v1826_v53 = vpop.f32.mrb[17].mxu0  ;;  %s2669_s30 = scalar_lea.hbm %s2779_s0, %s1729_s16 }
 0x4f7   : > { %v1144_v54 = vpop.f32.mrb[18].mxu0 }
 0x4f8   : > { %v1827_v55 = vpop.f32.mrb[19].mxu0 }
 0x4f9   : > { %v1726_v55 = vld [vmem:[%s2777_s19] ss:$0 sm:$0xff] }
 0x4fd   : > { %v1257_v56 = vpop.f32.mrb[20].mxu0 }
 0x4fe   : > { %1264 = vrot.lane.b32.xlu1 %v1257_v56, %s2232_s26  ;;  %v1838_v57 = vpop.f32.mrb[21].mxu0  ;;  %s1552_s26 = scalar_lea.sflag [#allocation5], %s604_s25 }
 0x4ff   : > { %v1260_v58 = vpop.f32.mrb[22].mxu0  ;;  %v1727_v57 = vld [vmem:[%s2778_s15] ss:$0 sm:$0xff] }
 0x500   : > { %v1839_v59 = vpop.f32.mrb[23].mxu0 }
 0x55f   : > { %v1033_v60 = vpop.permute.xlu1 %1032 }
 0x560   : > { %1036 = vst.msk [vmem:[#allocation2] sm:$0xff] %vm1035_vm4, %v1033_v60 }
 0x568   : > { %v1149_v61 = vpop.permute.xlu0 %1148 }
 0x569   : > { %1152 = vst.msk [vmem:[#allocation2] sm:$0xff] %vm1151_vm5, %v1149_v61 }
 0x570   : > { %v1265_v62 = vpop.permute.xlu1 %1264 }
 0x571   : > { %1268 = vst.msk [vmem:[#allocation2] sm:$0xff] %vm1267_vm6, %v1265_v62 }
 0x578   : > { %v1269_v63 = vld [vmem:[#allocation2] sm:$0xff] }
 0x579   : > { %v1270_v1 = vpack.c.bf16 %v1269_v63, %v1269_v63 }
 0x57b   : > { %1845 = vmatmul.mubr.msk.bf16.vlgmr.msra.gmra.mrb[20].mxu1 %vm637_vm1, %v1270_v1 }
 0x57c   : > { %1864 = vmatprep.mubr.msk.bf16.mxu1 %vm2226_vm0, %v2225_v0 }
 0x64e   : > { %v1331_v3 = vpop.f32.mrb[20].mxu1 }
 0x64f   : > { %v1332_v4 = vadd.f32 %v1710_v2, %v1331_v3  ;;  %v1846_v6 = vpop.f32.mrb[21].mxu1 }
 0x650   : > { %v1334_v7 = vpop.f32.mrb[22].mxu1 }
 0x651   : > { %v1847_v8 = vpop.f32.mrb[23].mxu1  ;;  %v1337_v9 = vadd.f32 %v1332_v4, %v2535_v5  ;;  %v1978_v5 = vld [vmem:[%s2725_s13] sm:$0xff]  }
 0x652   : > { %1857 = vmatpush3.bf16.msra.mxu1 %v1978_v5 }
 0x653   : > { %v1340_v10 = vsel %vm637_vm1, %v1337_v9, 0.0  ;;  %1858 = vmatprep.subr.bf16.mxu1 %v2225_v0 }
 0x654   : > { %1341 = vadd.xlane.f32.xlu0 %v1340_v10 }
 0x656   : > { %1859 = vmatpush3.bf16.msra.mxu1 %v1979_v18 }
 0x657   : > { %1860 = vmatprep.subr.bf16.mxu1 %v2225_v0 }
 0x65a   : > { %1861 = vmatpush3.bf16.msra.mxu1 %v1980_v29 }
 0x65b   : > { %1862 = vmatprep.subr.bf16.mxu1 %v2225_v0  ;;  %v1720_v0 = vld [vmem:[%s2726_s14] ss:$0 sm:$0xff] }
 0x65e   : > { %1863 = vmatpush3.bf16.msra.mxu1 %v1981_v30 }
 0x6e1   : > { %v1342_v11 = vpop.xlane.xlu0 %1341 }
 0x6e2   : > { %v1344_v12 = vmul.f32 0.03125, %v1342_v11 }
 0x6e4   : > { %v1345_v13 = vsub.f32 %v1337_v9, %v1344_v12 }
 0x6e6   : > { %v1346_v14 = vmul.f32 %v1345_v13, %v1345_v13 }
 0x6e8   : > { %v1347_v15 = vsel %vm637_vm1, %v1346_v14, 0.0 }
 0x6e9   : > { %1348 = vadd.xlane.f32.xlu1 %v1347_v15 }
 0x776   : > { %v1349_v19 = vpop.xlane.xlu1 %1348 }
 0x777   : > { %v1350_v20 = vmul.f32 0.03125, %v1349_v19 }
 0x779   : > { %v1351_v21 = vadd.f32 1e-05, %v1350_v20 }
 0x77b   : > { %1998 = vrsqrt.f32 %v1351_v21 }
 0x785   : > { %v1999_v22 = vpop.eup %1998 }
 0x786   : > { %v1353_v24 = vmul.f32 %v1999_v22, %v1345_v13 }
 0x788   : > { %v1360_v26 = vmul.f32 %v1714_v23, %v1353_v24 }
 0x78a   : > { %v1367_v27 = vadd.f32 %v1715_v25, %v1360_v26 }
 0x78c   : > { %v1368_v28 = vpack.c.bf16 %v1367_v27, %v1367_v27 }
 0x78e   : > { %1853 = vmatmul.mubr.msk.bf16.vlgmr.msra.gmra.mrb[24].mxu0 %vm637_vm1, %v1368_v28 }
 0x861   : > { %v1429_v32 = vpop.f32.mrb[24].mxu0 }
 0x862   : > { %v1430_v33 = vadd.f32 %v1716_v31, %v1429_v32  ;;  %v1854_v34 = vpop.f32.mrb[25].mxu0 }
 0x863   : > { %v1432_v35 = vpop.f32.mrb[26].mxu0 }
 0x864   : > { %v1435_v36 = vmax.f32 %v1430_v33, 0.0  ;;  %v1855_v37 = vpop.f32.mrb[27].mxu0 }
 0x866   : > { %v1436_v38 = vpack.c.bf16 %v1435_v36, %v1435_v36 }
 0x868   : > { %1865 = vmatmul.mubr.msk.bf16.vlgmr.msra.gmra.mrb[24].mxu1 %vm1476_vm7, %v1436_v38 }
 0x93b   : > { %v1514_v39 = vpop.f32.mrb[24].mxu1 }
 0x93c   : > { %v1515_v40 = vadd.f32 %v1720_v0, %v1514_v39  ;;  %v1866_v41 = vpop.f32.mrb[25].mxu1 }
 0x93d   : > { %v1517_v42 = vpop.f32.mrb[26].mxu1 }
 0x93e   : > { %v1867_v43 = vpop.f32.mrb[27].mxu1  ;;  %v1520_v44 = vadd.f32 %v1515_v40, %v1367_v27 }
 0x940   : > { %v1523_v45 = vsel %vm637_vm1, %v1520_v44, 0.0 }
 0x941   : > { %1524 = vadd.xlane.f32.xlu0 %v1523_v45 }
 0x9ce   : > { %v1525_v46 = vpop.xlane.xlu0 %1524 }
 0x9cf   : > { %v1526_v47 = vmul.f32 0.03125, %v1525_v46 }
 0x9d1   : > { %v1527_v48 = vsub.f32 %v1520_v44, %v1526_v47 }
 0x9d3   : > { %v1528_v49 = vmul.f32 %v1527_v48, %v1527_v48 }
 0x9d5   : > { %v1529_v50 = vsel %vm637_vm1, %v1528_v49, 0.0 }
 0x9d6   : > { %1530 = vadd.xlane.f32.xlu0 %v1529_v50 }
 0xa63   : > { %v1531_v51 = vpop.xlane.xlu0 %1530 }
 0xa64   : > { %v1532_v52 = vmul.f32 0.03125, %v1531_v51 }
 0xa66   : > { %v1533_v53 = vadd.f32 1e-05, %v1532_v52 }
 0xa68   : > { %2000 = vrsqrt.f32 %v1533_v53 }
 0xa72   : > { %v2001_v54 = vpop.eup %2000 }
 0xa73   : > { %v1535_v56 = vmul.f32 %v2001_v54, %v1527_v48 }
 0xa75   : > { %v1542_v58 = vmul.f32 %v1726_v55, %v1535_v56 }
 0xa77   : > { %v1549_v59 = vadd.f32 %v1727_v57, %v1542_v58 }
 0xa79   : > { %1550 = vst.msk [vmem:[%s606_s22] sm:$0xff] %vm637_vm1, %v1549_v59 }
 0xa7a   : > { %2155 = shalt.err (!%p2152_p1)
}
 0xa7b   : > { %s2156_s25 = scalar_lea.hbm %s2669_s30, 128  ;;  %s2160_s24 = scalar_lea.hbm %s2779_s0, 256 }
 0xa7c   : > { %p2157_p0 = scmp.ne.s32.totalorder %s2669_s30, %s2156_s25  ;;  %p2161_p9 = scmp.lt.u32.totalorder %s2669_s30, %s2779_s0 }
 0xa7d   : > { %p2162_p12 = scmp.lt.u32.totalorder %s2160_s24, %s2156_s25  ;;  %p2164_p2 = scmp.lt.u32.totalorder %s2156_s25, %s2669_s30 }
 0xa7e   : > { %p2158_p6 = pnand %p2157_p0, %p2780_p3 }
 0xa7f   : > { %p2163_p10 = por %p2162_p12, %p2161_p9 }
 0xa80   : > { %p2159_p5 = pneg %p2158_p6 }
 0xa81   : > { %p2165_p4 = por %p2164_p2, %p2163_p10 }
 0xa83   : > { %p2166_p7 = pnand %p2165_p4, %p2159_p5 }
 0xa85   : > { %2169 = shalt.err (!%p2166_p7)
}
 0xa86   : > { %1888 = dma.vmem_to_hbm [thread:$0]  (%p2780_p3), %s2671_s21, 128, %s2669_s30, %s1552_s26  }
 0xa87 PF: > { %s2781_s16 = sld [smem:[#allocation20_spill]]  ;;  %s2782_s22 = sld [smem:[#allocation17_spill]] }
 0xa88   : > { %s2783_s18 = sld [smem:[#allocation24_spill]] }
 0xa8d   : > { %p1920_p8 = scmp.ge.s32.totalorder %s2781_s16, 2  ;;  %s1577_s29 = sand.u32 1, %s2782_s22  }
 0xa8e   : > { %p2784_p11 = scmp.ne.s32.totalorder %s2783_s18, 0  ;;  %s1578_s8 = scalar_lea.sflag [#allocation5], %s1577_s29 }
 0xa90   : > { %p1907_p13 = pnand %p1920_p8, %p2784_p11 }
 0xa92   : > { %2199 = dma.done.wait (!%p1907_p13), %s1578_s8, 128  }
 0xa93   : > { %2201 = vsyncadd (!%p1907_p13), %s1578_s8, 4294967168  ;;  %s2785_s27 = sld [smem:[#allocation21_spill]]  ;;  %s2786_s24 = sld [smem:[#allocation18_spill]] }
 0xa94   : > { %s2787_s25 = sld [smem:[#allocation19_spill]]  ;;  %s2788_s26 = sld [smem:[#allocation22_spill]] }
 0xa99   : > { %p30_p1 = scmp.ge.s32.totalorder %s2785_s27, 4  }
 0xa9b   :  { %32 = sbr.rel (!%p30_p1) target bundleno = 14 (0xe), region = 144 }
 0xaa2   :  { %1583 = vsyncpa [#allocation4], 1 }
 0xaa3   :  { %1585 = vsyncpa [#allocation4 + $0x1], 1 }
 0xaa4   :  { %1586 = vsyncpa [#allocation7], 1 }
 0xaa5   :  { %1587 = vsyncpa [#allocation10], 1 }
 0xaa6   :  { %1588 = vsyncpa [#allocation5], 1 }
 0xaa7   :  { %1590 = vsyncpa [#allocation5 + $0x1], 1 }

</bundles_post_ra>
